<compile_context>
chip_gen: v5e
topology: v5e:2x2
jax: 0.10.0
libtpu: 0.0.40
codegen_flags: <defaults>
</compile_context>

<pallas_src>
import math
import functools

import jax
import jax.numpy as jnp
from jax.experimental import pallas as pl
from jax.experimental.pallas import tpu as pltpu

# ----------------------------- small synthetic config -----------------------------
B = 2          # batch
C = 3          # image channels
IMG = 16       # image size
P = 8          # patch size
N = (IMG // P) ** 2          # tokens per image = 4
D = 128        # hidden size
HEADS = 2
HEAD_DIM = D // HEADS        # 64
FFN = 256      # intermediate size
LAYERS = 3
SELECT_LAYER = -2            # args.mm_vision_select_layer
LN_EPS = 1e-6                # SigLIP layer_norm_eps


# ----------------------------- in-kernel helpers -----------------------------
def _layer_norm(x, w, b):
    mu = jnp.mean(x, axis=-1, keepdims=True)
    var = jnp.mean((x - mu) ** 2, axis=-1, keepdims=True)
    return (x - mu) * jax.lax.rsqrt(var + LN_EPS) * w + b


def _gelu_tanh(x):
    # gelu_pytorch_tanh
    c = math.sqrt(2.0 / math.pi)
    return 0.5 * x * (1.0 + jnp.tanh(c * (x + 0.044715 * x * x * x)))


# ----------------------------- fused tower kernel -----------------------------
def _fused_tower_kernel(patches_ref, pw_ref, pb_ref, pos_ref, bias_ref,
                        ln1w, ln1b, wqkv, bqkv, wo, bo,
                        ln2w, ln2b, wfc1, bfc1, wfc2, bfc2,
                        o_ref,
                        *, n_layers, n_images, n_heads, head_dim, hidden):
    bn = o_ref.shape[0]                    # B*N flattened tokens (sublane axis)

    # ---- patch embedding + bias + learned position embeddings ----
    emb = jnp.dot(patches_ref[...], pw_ref[...],
                  preferred_element_type=jnp.float32)               # (B*N, D) f32
    x = emb + pb_ref[...] + jnp.tile(pos_ref[...], (n_images, 1))   # broadcast pos over images

    # additive block-diagonal mask bias (0 within an image, -1e30 across images),
    # precomputed in the wrapper and loaded once -- reused by every layer.
    bias = bias_ref[...]                                            # (B*N, B*N) f32

    # Statically unrolled layer loop: all live-layer weights are VMEM-resident here.
    for l in range(n_layers):
        # ---- self-attention block (pre-LN) ----
        h = _layer_norm(x, ln1w[l], ln1b[l])
        # Fused QKV projection; 1/sqrt(head_dim) already folded into the Q weights/bias.
        qkv = jnp.dot(h.astype(jnp.bfloat16), wqkv[l],
                      preferred_element_type=jnp.float32) + bqkv[l]  # (B*N, 3D) f32
        qkv_bf = qkv.astype(jnp.bfloat16)                            # single cast
        q = qkv_bf[:, 0:hidden]                                      # 128-lane-aligned slabs
        k = qkv_bf[:, hidden:2 * hidden]
        v = qkv_bf[:, 2 * hidden:3 * hidden]
        wo_l = wo[l]                                                 # (D, D) bf16

        attn = jnp.zeros((bn, hidden), jnp.float32)
        for hd in range(n_heads):            # static unroll over heads (tiny here)
            lo = hd * head_dim
            qh = q[:, lo:lo + head_dim]
            kh = k[:, lo:lo + head_dim]
            vh = v[:, lo:lo + head_dim]
            # scores = qh @ kh^T without an explicit transpose, + block-diagonal bias
            s = jax.lax.dot_general(qh, kh, (((1,), (1,)), ((), ())),
                                    preferred_element_type=jnp.float32) + bias
            s = s - jnp.max(s, axis=-1, keepdims=True)
            p = jnp.exp(s)
            p = p * pl.reciprocal(jnp.sum(p, axis=-1, keepdims=True), approx=True)
            pv = jnp.dot(p.astype(jnp.bfloat16), vh,
                         preferred_element_type=jnp.float32)         # (B*N, head_dim)
            # accumulate straight through this head's W_o row-slab (no concat over heads)
            attn = attn + jnp.dot(pv.astype(jnp.bfloat16),
                                  wo_l[lo:lo + head_dim, :],
                                  preferred_element_type=jnp.float32)
        x = x + attn + bo[l]

        # ---- MLP block (pre-LN): fc1 -> gelu_tanh -> fc2 ----
        h = _layer_norm(x, ln2w[l], ln2b[l])
        h = jnp.dot(h.astype(jnp.bfloat16), wfc1[l],
                    preferred_element_type=jnp.float32) + bfc1[l]
        h = _gelu_tanh(h)
        h = jnp.dot(h.astype(jnp.bfloat16), wfc2[l],
                    preferred_element_type=jnp.float32) + bfc2[l]
        x = x + h

    o_ref[...] = x.astype(o_ref.dtype)


# ----------------------------- parameter preparation -----------------------------
_STACKED_WEIGHT_NAMES = ('ln1w', 'ln1b', 'wqkv', 'bqkv', 'wo', 'bo',
                         'ln2w', 'ln2b', 'wfc1', 'bfc1', 'wfc2', 'bfc2')


def prepare_params(raw, select_layer=SELECT_LAYER):
    """Drop dead layers, stack per-layer weights, fuse QKV, fold the attention scale,
    zero-pad the patch contraction dim to a 256 multiple, and cast matmul weights to
    bf16 (biases / LN params / pos stay fp32)."""
    n_layers = len(raw['layers'])
    n_used = n_layers + 1 + select_layer if select_layer < 0 else select_layer
    assert 1 <= n_used <= n_layers
    used = raw['layers'][:n_used]

    scale = 1.0 / math.sqrt(HEAD_DIM)

    def stack(name):
        return jnp.stack([lp[name] for lp in used], axis=0)

    wqkv = jnp.stack([jnp.concatenate([lp['wq'] * scale, lp['wk'], lp['wv']], axis=1)
                      for lp in used], axis=0)                     # (L, D, 3D)
    bqkv = jnp.stack([jnp.concatenate([lp['bq'] * scale, lp['bk'], lp['bv']], axis=1)
                      for lp in used], axis=0)                     # (L, 1, 3D)

    # pad C*P*P (=192) up to a multiple of 256 so patch-embed matmul tiles are clean
    kdim = raw['patch_w'].shape[0]
    kpad = ((kdim + 255) // 256) * 256
    patch_w = jnp.pad(raw['patch_w'], ((0, kpad - kdim), (0, 0)))

    return {
        'n_used': n_used,
        'patch_kdim': kdim,
        'patch_w': patch_w.astype(jnp.bfloat16),                   # (kpad, D) bf16
        'patch_b': raw['patch_b'],                                 # (1, D) f32
        'pos': raw['pos'],                                         # (N, D) f32 (not tiled)
        'ln1w': stack('ln1w'), 'ln1b': stack('ln1b'),              # (L, 1, D) f32
        'wqkv': wqkv.astype(jnp.bfloat16),
        'bqkv': bqkv,
        'wo': stack('wo').astype(jnp.bfloat16),                    # (L, D, D)
        'bo': stack('bo'),
        'ln2w': stack('ln2w'), 'ln2b': stack('ln2b'),
        'wfc1': stack('wfc1').astype(jnp.bfloat16),                # (L, D, FFN)
        'bfc1': stack('bfc1'),
        'wfc2': stack('wfc2').astype(jnp.bfloat16),                # (L, FFN, D)
        'bfc2': stack('bfc2'),
    }


# ----------------------------- module forward -----------------------------
def siglip_vision_tower_forward(images, prepared):
    """images: (B, C, H, W) NCHW. Returns (B, N, D) features ('cls_patch' keeps all tokens)."""
    bsz, c, h, w = images.shape
    n_tok = (h // P) * (w // P)
    bn = bsz * n_tok
    hidden = prepared['patch_w'].shape[1]
    kpad = prepared['patch_w'].shape[0]

    x = images.astype(jnp.float32)
    # Unfold non-overlapping patches: Conv2d(k=P, stride=P) == matmul over (C,P,P) blocks.
    patches = x.reshape(bsz, c, h // P, P, w // P, P)
    patches = patches.transpose(0, 2, 4, 1, 3, 5).reshape(bn, c * P * P)
    patches = jnp.pad(patches, ((0, 0), (0, kpad - c * P * P))).astype(jnp.bfloat16)

    # additive block-diagonal image mask, built ONCE (loop-invariant across layers)
    img_id = jnp.arange(bn, dtype=jnp.int32) // n_tok
    attn_bias = jnp.where(img_id[:, None] == img_id[None, :],
                          0.0, -1e30).astype(jnp.float32)          # (B*N, B*N)

    w_args = [prepared[name] for name in _STACKED_WEIGHT_NAMES]

    kernel = functools.partial(_fused_tower_kernel,
                               n_layers=prepared['n_used'], n_images=bsz,
                               n_heads=HEADS, head_dim=HEAD_DIM, hidden=hidden)

    out = pl.pallas_call(
        kernel,
        out_shape=jax.ShapeDtypeStruct((bn, hidden), images.dtype),
        compiler_params=pltpu.CompilerParams(vmem_limit_bytes=32 * 1024 * 1024),
    )(patches, prepared['patch_w'], prepared['patch_b'], prepared['pos'], attn_bias,
      *w_args)

    return out.reshape(bsz, n_tok, hidden)


# ----------------------------- deterministic parameter init -----------------------------
def init_params(key):
    keys = iter(jax.random.split(key, 8 + LAYERS * 16))

    def nrm(shape):
        return 0.02 * jax.random.normal(next(keys), shape, jnp.float32)

    params = {
        'patch_w': nrm((C * P * P, D)),   # Conv2d weight (D,C,P,P) flattened & transposed
        'patch_b': nrm((1, D)),
        'pos': nrm((N, D)),
        'layers': [],
    }
    for _ in range(LAYERS):
        params['layers'].append({
            'ln1w': jnp.ones((1, D), jnp.float32), 'ln1b': jnp.zeros((1, D), jnp.float32),
            'wq': nrm((D, D)), 'bq': nrm((1, D)),
            'wk': nrm((D, D)), 'bk': nrm((1, D)),
            'wv': nrm((D, D)), 'bv': nrm((1, D)),
            'wo': nrm((D, D)), 'bo': nrm((1, D)),
            'ln2w': jnp.ones((1, D), jnp.float32), 'ln2b': jnp.zeros((1, D), jnp.float32),
            'wfc1': nrm((D, FFN)), 'bfc1': nrm((1, FFN)),
            'wfc2': nrm((FFN, D)), 'bfc2': nrm((1, D)),
        })
    return params


# ----------------------------- main -----------------------------
if __name__ == "__main__":
    images = jax.random.normal(jax.random.PRNGKey(0), (B, C, IMG, IMG), dtype=jnp.float32)
    raw_params = init_params(jax.random.PRNGKey(1))
    prepared = prepare_params(raw_params, SELECT_LAYER)

    feats = siglip_vision_tower_forward(images, prepared)
    feats = jax.block_until_ready(feats)

    assert feats.shape == (B, N, D), feats.shape
    assert feats.dtype == images.dtype
    assert bool(jnp.all(jnp.isfinite(feats)))
    print("KERNEL_OK")
</pallas_src>

<mosaic_0001>
module attributes {stable_mosaic.version = 11 : i64} {
  func.func @_fused_tower_kernel(%arg0: memref<8x256xbf16, #tpu.memory_space<vmem>>, %arg1: memref<256x128xbf16, #tpu.memory_space<vmem>>, %arg2: memref<1x128xf32, #tpu.memory_space<vmem>>, %arg3: memref<4x128xf32, #tpu.memory_space<vmem>>, %arg4: memref<8x8xf32, #tpu.memory_space<vmem>>, %arg5: memref<2x1x128xf32, #tpu.memory_space<vmem>>, %arg6: memref<2x1x128xf32, #tpu.memory_space<vmem>>, %arg7: memref<2x128x384xbf16, #tpu.memory_space<vmem>>, %arg8: memref<2x1x384xf32, #tpu.memory_space<vmem>>, %arg9: memref<2x128x128xbf16, #tpu.memory_space<vmem>>, %arg10: memref<2x1x128xf32, #tpu.memory_space<vmem>>, %arg11: memref<2x1x128xf32, #tpu.memory_space<vmem>>, %arg12: memref<2x1x128xf32, #tpu.memory_space<vmem>>, %arg13: memref<2x128x256xbf16, #tpu.memory_space<vmem>>, %arg14: memref<2x1x256xf32, #tpu.memory_space<vmem>>, %arg15: memref<2x256x128xbf16, #tpu.memory_space<vmem>>, %arg16: memref<2x1x128xf32, #tpu.memory_space<vmem>>, %arg17: memref<8x128xf32, #tpu.memory_space<vmem>>) attributes {dimension_semantics = [], scalar_prefetch = 0 : i64, scratch_operands = 0 : i64, tpu.core_type = #tpu.core_type<tc>} {
    %c0 = arith.constant 0 : index
    %c0_0 = arith.constant 0 : index
    %0 = vector.load %arg0[%c0, %c0_0] : memref<8x256xbf16, #tpu.memory_space<vmem>>, vector<8x256xbf16>
    %c0_1 = arith.constant 0 : index
    %c0_2 = arith.constant 0 : index
    %1 = vector.load %arg1[%c0_1, %c0_2] : memref<256x128xbf16, #tpu.memory_space<vmem>>, vector<256x128xbf16>
    %cst = arith.constant dense<0.000000e+00> : vector<8x128xf32>
    %2 = tpu.matmul %0, %1, %cst {dimension_numbers = #tpu.dot_dimension_numbers<[1], [0], [0], [1], [0, 0, 1, 1], [], []>} : vector<8x256xbf16>, vector<256x128xbf16>, vector<8x128xf32> -> vector<8x128xf32>
    %c0_3 = arith.constant 0 : index
    %c0_4 = arith.constant 0 : index
    %3 = vector.load %arg2[%c0_3, %c0_4] : memref<1x128xf32, #tpu.memory_space<vmem>>, vector<1x128xf32>
    %4 = vector.broadcast %3 : vector<1x128xf32> to vector<8x128xf32>
    %5 = arith.addf %2, %4 : vector<8x128xf32>
    %c0_5 = arith.constant 0 : index
    %c0_6 = arith.constant 0 : index
    %6 = vector.load %arg3[%c0_5, %c0_6] : memref<4x128xf32, #tpu.memory_space<vmem>>, vector<4x128xf32>
    %7 = tpu.concatenate %6, %6 in 0 : vector<4x128xf32>, vector<4x128xf32> -> vector<8x128xf32>
    %8 = arith.addf %5, %7 : vector<8x128xf32>
    %c0_7 = arith.constant 0 : index
    %c0_8 = arith.constant 0 : index
    %9 = vector.load %arg4[%c0_7, %c0_8] : memref<8x8xf32, #tpu.memory_space<vmem>>, vector<8x8xf32>
    %c0_9 = arith.constant 0 : index
    %c0_10 = arith.constant 0 : index
    %c0_11 = arith.constant 0 : index
    %10 = vector.load %arg5[%c0_9, %c0_10, %c0_11] : memref<2x1x128xf32, #tpu.memory_space<vmem>>, vector<1x1x128xf32>
    %11 = vector.shape_cast %10 : vector<1x1x128xf32> to vector<1x128xf32>
    %c0_12 = arith.constant 0 : index
    %c0_13 = arith.constant 0 : index
    %c0_14 = arith.constant 0 : index
    %12 = vector.load %arg6[%c0_12, %c0_13, %c0_14] : memref<2x1x128xf32, #tpu.memory_space<vmem>>, vector<1x1x128xf32>
    %13 = vector.shape_cast %12 : vector<1x1x128xf32> to vector<1x128xf32>
    %cst_15 = arith.constant dense<0.000000e+00> : vector<8xf32>
    %14 = vector.multi_reduction <add>, %8, %cst_15 [1] : vector<8x128xf32> to vector<8xf32>
    %15 = vector.shape_cast %14 : vector<8xf32> to vector<8x1xf32>
    %cst_16 = arith.constant 1.280000e+02 : f32
    %16 = vector.broadcast %cst_16 : f32 to vector<8x1xf32>
    %17 = arith.divf %15, %16 : vector<8x1xf32>
    %18 = vector.broadcast %17 : vector<8x1xf32> to vector<8x128xf32>
    %19 = arith.subf %8, %18 : vector<8x128xf32>
    %20 = arith.mulf %19, %19 : vector<8x128xf32>
    %cst_17 = arith.constant dense<0.000000e+00> : vector<8xf32>
    %21 = vector.multi_reduction <add>, %20, %cst_17 [1] : vector<8x128xf32> to vector<8xf32>
    %22 = vector.shape_cast %21 : vector<8xf32> to vector<8x1xf32>
    %cst_18 = arith.constant 1.280000e+02 : f32
    %23 = vector.broadcast %cst_18 : f32 to vector<8x1xf32>
    %24 = arith.divf %22, %23 : vector<8x1xf32>
    %25 = vector.broadcast %17 : vector<8x1xf32> to vector<8x128xf32>
    %26 = arith.subf %8, %25 : vector<8x128xf32>
    %cst_19 = arith.constant 9.99999997E-7 : f32
    %27 = vector.broadcast %cst_19 : f32 to vector<8x1xf32>
    %28 = arith.addf %24, %27 : vector<8x1xf32>
    %29 = math.rsqrt %28 : vector<8x1xf32>
    %30 = vector.broadcast %29 : vector<8x1xf32> to vector<8x128xf32>
    %31 = arith.mulf %26, %30 : vector<8x128xf32>
    %32 = vector.broadcast %11 : vector<1x128xf32> to vector<8x128xf32>
    %33 = arith.mulf %31, %32 : vector<8x128xf32>
    %34 = vector.broadcast %13 : vector<1x128xf32> to vector<8x128xf32>
    %35 = arith.addf %33, %34 : vector<8x128xf32>
    %36 = arith.truncf %35 : vector<8x128xf32> to vector<8x128xbf16>
    %c0_20 = arith.constant 0 : index
    %c0_21 = arith.constant 0 : index
    %c0_22 = arith.constant 0 : index
    %37 = vector.load %arg7[%c0_20, %c0_21, %c0_22] : memref<2x128x384xbf16, #tpu.memory_space<vmem>>, vector<1x128x384xbf16>
    %38 = vector.shape_cast %37 : vector<1x128x384xbf16> to vector<128x384xbf16>
    %cst_23 = arith.constant dense<0.000000e+00> : vector<8x384xf32>
    %39 = tpu.matmul %36, %38, %cst_23 {dimension_numbers = #tpu.dot_dimension_numbers<[1], [0], [0], [1], [0, 0, 1, 1], [], []>} : vector<8x128xbf16>, vector<128x384xbf16>, vector<8x384xf32> -> vector<8x384xf32>
    %c0_24 = arith.constant 0 : index
    %c0_25 = arith.constant 0 : index
    %c0_26 = arith.constant 0 : index
    %40 = vector.load %arg8[%c0_24, %c0_25, %c0_26] : memref<2x1x384xf32, #tpu.memory_space<vmem>>, vector<1x1x384xf32>
    %41 = vector.shape_cast %40 : vector<1x1x384xf32> to vector<1x384xf32>
    %42 = vector.broadcast %41 : vector<1x384xf32> to vector<8x384xf32>
    %43 = arith.addf %39, %42 : vector<8x384xf32>
    %44 = arith.truncf %43 : vector<8x384xf32> to vector<8x384xbf16>
    %45 = vector.extract_strided_slice %44 {offsets = [0, 0], sizes = [8, 128], strides = [1, 1]} : vector<8x384xbf16> to vector<8x128xbf16>
    %46 = vector.extract_strided_slice %44 {offsets = [0, 128], sizes = [8, 128], strides = [1, 1]} : vector<8x384xbf16> to vector<8x128xbf16>
    %47 = vector.extract_strided_slice %44 {offsets = [0, 256], sizes = [8, 128], strides = [1, 1]} : vector<8x384xbf16> to vector<8x128xbf16>
    %c0_27 = arith.constant 0 : index
    %c0_28 = arith.constant 0 : index
    %c0_29 = arith.constant 0 : index
    %48 = vector.load %arg9[%c0_27, %c0_28, %c0_29] : memref<2x128x128xbf16, #tpu.memory_space<vmem>>, vector<1x128x128xbf16>
    %49 = vector.shape_cast %48 : vector<1x128x128xbf16> to vector<128x128xbf16>
    %cst_30 = arith.constant 0.000000e+00 : f32
    %50 = vector.broadcast %cst_30 : f32 to vector<8x128xf32>
    %51 = vector.extract_strided_slice %45 {offsets = [0, 0], sizes = [8, 64], strides = [1, 1]} : vector<8x128xbf16> to vector<8x64xbf16>
    %52 = vector.extract_strided_slice %46 {offsets = [0, 0], sizes = [8, 64], strides = [1, 1]} : vector<8x128xbf16> to vector<8x64xbf16>
    %53 = vector.extract_strided_slice %47 {offsets = [0, 0], sizes = [8, 64], strides = [1, 1]} : vector<8x128xbf16> to vector<8x64xbf16>
    %cst_31 = arith.constant dense<0.000000e+00> : vector<8x8xf32>
    %54 = tpu.matmul %51, %52, %cst_31 {dimension_numbers = #tpu.dot_dimension_numbers<[1], [1], [0], [0], [0, 0, 1, 0], [], []>} : vector<8x64xbf16>, vector<8x64xbf16>, vector<8x8xf32> -> vector<8x8xf32>
    %55 = arith.addf %54, %9 : vector<8x8xf32>
    %cst_32 = arith.constant dense<0xFF800000> : vector<8xf32>
    %56 = vector.multi_reduction <maximumf>, %55, %cst_32 [1] : vector<8x8xf32> to vector<8xf32>
    %57 = vector.shape_cast %56 : vector<8xf32> to vector<8x1xf32>
    %58 = vector.broadcast %57 : vector<8x1xf32> to vector<8x8xf32>
    %59 = arith.subf %55, %58 : vector<8x8xf32>
    %60 = math.exp %59 : vector<8x8xf32>
    %cst_33 = arith.constant dense<0.000000e+00> : vector<8xf32>
    %61 = vector.multi_reduction <add>, %60, %cst_33 [1] : vector<8x8xf32> to vector<8xf32>
    %62 = vector.shape_cast %61 : vector<8xf32> to vector<8x1xf32>
    %63 = tpu.reciprocal %62 {approx = true} : vector<8x1xf32> -> vector<8x1xf32>
    %64 = vector.broadcast %63 : vector<8x1xf32> to vector<8x8xf32>
    %65 = arith.mulf %60, %64 : vector<8x8xf32>
    %66 = arith.truncf %65 : vector<8x8xf32> to vector<8x8xbf16>
    %cst_34 = arith.constant dense<0.000000e+00> : vector<8x64xf32>
    %67 = tpu.matmul %66, %53, %cst_34 {dimension_numbers = #tpu.dot_dimension_numbers<[1], [0], [0], [1], [0, 0, 1, 1], [], []>} : vector<8x8xbf16>, vector<8x64xbf16>, vector<8x64xf32> -> vector<8x64xf32>
    %68 = arith.truncf %67 : vector<8x64xf32> to vector<8x64xbf16>
    %69 = vector.extract_strided_slice %49 {offsets = [0, 0], sizes = [64, 128], strides = [1, 1]} : vector<128x128xbf16> to vector<64x128xbf16>
    %cst_35 = arith.constant dense<0.000000e+00> : vector<8x128xf32>
    %70 = tpu.matmul %68, %69, %cst_35 {dimension_numbers = #tpu.dot_dimension_numbers<[1], [0], [0], [1], [0, 0, 1, 1], [], []>} : vector<8x64xbf16>, vector<64x128xbf16>, vector<8x128xf32> -> vector<8x128xf32>
    %71 = arith.addf %50, %70 : vector<8x128xf32>
    %72 = vector.extract_strided_slice %45 {offsets = [0, 64], sizes = [8, 64], strides = [1, 1]} : vector<8x128xbf16> to vector<8x64xbf16>
    %73 = vector.extract_strided_slice %46 {offsets = [0, 64], sizes = [8, 64], strides = [1, 1]} : vector<8x128xbf16> to vector<8x64xbf16>
    %74 = vector.extract_strided_slice %47 {offsets = [0, 64], sizes = [8, 64], strides = [1, 1]} : vector<8x128xbf16> to vector<8x64xbf16>
    %cst_36 = arith.constant dense<0.000000e+00> : vector<8x8xf32>
    %75 = tpu.matmul %72, %73, %cst_36 {dimension_numbers = #tpu.dot_dimension_numbers<[1], [1], [0], [0], [0, 0, 1, 0], [], []>} : vector<8x64xbf16>, vector<8x64xbf16>, vector<8x8xf32> -> vector<8x8xf32>
    %76 = arith.addf %75, %9 : vector<8x8xf32>
    %cst_37 = arith.constant dense<0xFF800000> : vector<8xf32>
    %77 = vector.multi_reduction <maximumf>, %76, %cst_37 [1] : vector<8x8xf32> to vector<8xf32>
    %78 = vector.shape_cast %77 : vector<8xf32> to vector<8x1xf32>
    %79 = vector.broadcast %78 : vector<8x1xf32> to vector<8x8xf32>
    %80 = arith.subf %76, %79 : vector<8x8xf32>
    %81 = math.exp %80 : vector<8x8xf32>
    %cst_38 = arith.constant dense<0.000000e+00> : vector<8xf32>
    %82 = vector.multi_reduction <add>, %81, %cst_38 [1] : vector<8x8xf32> to vector<8xf32>
    %83 = vector.shape_cast %82 : vector<8xf32> to vector<8x1xf32>
    %84 = tpu.reciprocal %83 {approx = true} : vector<8x1xf32> -> vector<8x1xf32>
    %85 = vector.broadcast %84 : vector<8x1xf32> to vector<8x8xf32>
    %86 = arith.mulf %81, %85 : vector<8x8xf32>
    %87 = arith.truncf %86 : vector<8x8xf32> to vector<8x8xbf16>
    %cst_39 = arith.constant dense<0.000000e+00> : vector<8x64xf32>
    %88 = tpu.matmul %87, %74, %cst_39 {dimension_numbers = #tpu.dot_dimension_numbers<[1], [0], [0], [1], [0, 0, 1, 1], [], []>} : vector<8x8xbf16>, vector<8x64xbf16>, vector<8x64xf32> -> vector<8x64xf32>
    %89 = arith.truncf %88 : vector<8x64xf32> to vector<8x64xbf16>
    %90 = vector.extract_strided_slice %49 {offsets = [64, 0], sizes = [64, 128], strides = [1, 1]} : vector<128x128xbf16> to vector<64x128xbf16>
    %cst_40 = arith.constant dense<0.000000e+00> : vector<8x128xf32>
    %91 = tpu.matmul %89, %90, %cst_40 {dimension_numbers = #tpu.dot_dimension_numbers<[1], [0], [0], [1], [0, 0, 1, 1], [], []>} : vector<8x64xbf16>, vector<64x128xbf16>, vector<8x128xf32> -> vector<8x128xf32>
    %92 = arith.addf %71, %91 : vector<8x128xf32>
    %93 = arith.addf %8, %92 : vector<8x128xf32>
    %c0_41 = arith.constant 0 : index
    %c0_42 = arith.constant 0 : index
    %c0_43 = arith.constant 0 : index
    %94 = vector.load %arg10[%c0_41, %c0_42, %c0_43] : memref<2x1x128xf32, #tpu.memory_space<vmem>>, vector<1x1x128xf32>
    %95 = vector.shape_cast %94 : vector<1x1x128xf32> to vector<1x128xf32>
    %96 = vector.broadcast %95 : vector<1x128xf32> to vector<8x128xf32>
    %97 = arith.addf %93, %96 : vector<8x128xf32>
    %c0_44 = arith.constant 0 : index
    %c0_45 = arith.constant 0 : index
    %c0_46 = arith.constant 0 : index
    %98 = vector.load %arg11[%c0_44, %c0_45, %c0_46] : memref<2x1x128xf32, #tpu.memory_space<vmem>>, vector<1x1x128xf32>
    %99 = vector.shape_cast %98 : vector<1x1x128xf32> to vector<1x128xf32>
    %c0_47 = arith.constant 0 : index
    %c0_48 = arith.constant 0 : index
    %c0_49 = arith.constant 0 : index
    %100 = vector.load %arg12[%c0_47, %c0_48, %c0_49] : memref<2x1x128xf32, #tpu.memory_space<vmem>>, vector<1x1x128xf32>
    %101 = vector.shape_cast %100 : vector<1x1x128xf32> to vector<1x128xf32>
    %cst_50 = arith.constant dense<0.000000e+00> : vector<8xf32>
    %102 = vector.multi_reduction <add>, %97, %cst_50 [1] : vector<8x128xf32> to vector<8xf32>
    %103 = vector.shape_cast %102 : vector<8xf32> to vector<8x1xf32>
    %cst_51 = arith.constant 1.280000e+02 : f32
    %104 = vector.broadcast %cst_51 : f32 to vector<8x1xf32>
    %105 = arith.divf %103, %104 : vector<8x1xf32>
    %106 = vector.broadcast %105 : vector<8x1xf32> to vector<8x128xf32>
    %107 = arith.subf %97, %106 : vector<8x128xf32>
    %108 = arith.mulf %107, %107 : vector<8x128xf32>
    %cst_52 = arith.constant dense<0.000000e+00> : vector<8xf32>
    %109 = vector.multi_reduction <add>, %108, %cst_52 [1] : vector<8x128xf32> to vector<8xf32>
    %110 = vector.shape_cast %109 : vector<8xf32> to vector<8x1xf32>
    %cst_53 = arith.constant 1.280000e+02 : f32
    %111 = vector.broadcast %cst_53 : f32 to vector<8x1xf32>
    %112 = arith.divf %110, %111 : vector<8x1xf32>
    %113 = vector.broadcast %105 : vector<8x1xf32> to vector<8x128xf32>
    %114 = arith.subf %97, %113 : vector<8x128xf32>
    %cst_54 = arith.constant 9.99999997E-7 : f32
    %115 = vector.broadcast %cst_54 : f32 to vector<8x1xf32>
    %116 = arith.addf %112, %115 : vector<8x1xf32>
    %117 = math.rsqrt %116 : vector<8x1xf32>
    %118 = vector.broadcast %117 : vector<8x1xf32> to vector<8x128xf32>
    %119 = arith.mulf %114, %118 : vector<8x128xf32>
    %120 = vector.broadcast %99 : vector<1x128xf32> to vector<8x128xf32>
    %121 = arith.mulf %119, %120 : vector<8x128xf32>
    %122 = vector.broadcast %101 : vector<1x128xf32> to vector<8x128xf32>
    %123 = arith.addf %121, %122 : vector<8x128xf32>
    %124 = arith.truncf %123 : vector<8x128xf32> to vector<8x128xbf16>
    %c0_55 = arith.constant 0 : index
    %c0_56 = arith.constant 0 : index
    %c0_57 = arith.constant 0 : index
    %125 = vector.load %arg13[%c0_55, %c0_56, %c0_57] : memref<2x128x256xbf16, #tpu.memory_space<vmem>>, vector<1x128x256xbf16>
    %126 = vector.shape_cast %125 : vector<1x128x256xbf16> to vector<128x256xbf16>
    %cst_58 = arith.constant dense<0.000000e+00> : vector<8x256xf32>
    %127 = tpu.matmul %124, %126, %cst_58 {dimension_numbers = #tpu.dot_dimension_numbers<[1], [0], [0], [1], [0, 0, 1, 1], [], []>} : vector<8x128xbf16>, vector<128x256xbf16>, vector<8x256xf32> -> vector<8x256xf32>
    %c0_59 = arith.constant 0 : index
    %c0_60 = arith.constant 0 : index
    %c0_61 = arith.constant 0 : index
    %128 = vector.load %arg14[%c0_59, %c0_60, %c0_61] : memref<2x1x256xf32, #tpu.memory_space<vmem>>, vector<1x1x256xf32>
    %129 = vector.shape_cast %128 : vector<1x1x256xf32> to vector<1x256xf32>
    %130 = vector.broadcast %129 : vector<1x256xf32> to vector<8x256xf32>
    %131 = arith.addf %127, %130 : vector<8x256xf32>
    %cst_62 = arith.constant 5.000000e-01 : f32
    %132 = vector.broadcast %cst_62 : f32 to vector<8x256xf32>
    %133 = arith.mulf %132, %131 : vector<8x256xf32>
    %cst_63 = arith.constant 4.471500e-02 : f32
    %134 = vector.broadcast %cst_63 : f32 to vector<8x256xf32>
    %135 = arith.mulf %134, %131 : vector<8x256xf32>
    %136 = arith.mulf %135, %131 : vector<8x256xf32>
    %137 = arith.mulf %136, %131 : vector<8x256xf32>
    %138 = arith.addf %131, %137 : vector<8x256xf32>
    %cst_64 = arith.constant 0.797884583 : f32
    %139 = vector.broadcast %cst_64 : f32 to vector<8x256xf32>
    %140 = arith.mulf %139, %138 : vector<8x256xf32>
    %141 = math.tanh %140 : vector<8x256xf32>
    %cst_65 = arith.constant 1.000000e+00 : f32
    %142 = vector.broadcast %cst_65 : f32 to vector<8x256xf32>
    %143 = arith.addf %142, %141 : vector<8x256xf32>
    %144 = arith.mulf %133, %143 : vector<8x256xf32>
    %145 = arith.truncf %144 : vector<8x256xf32> to vector<8x256xbf16>
    %c0_66 = arith.constant 0 : index
    %c0_67 = arith.constant 0 : index
    %c0_68 = arith.constant 0 : index
    %146 = vector.load %arg15[%c0_66, %c0_67, %c0_68] : memref<2x256x128xbf16, #tpu.memory_space<vmem>>, vector<1x256x128xbf16>
    %147 = vector.shape_cast %146 : vector<1x256x128xbf16> to vector<256x128xbf16>
    %cst_69 = arith.constant dense<0.000000e+00> : vector<8x128xf32>
    %148 = tpu.matmul %145, %147, %cst_69 {dimension_numbers = #tpu.dot_dimension_numbers<[1], [0], [0], [1], [0, 0, 1, 1], [], []>} : vector<8x256xbf16>, vector<256x128xbf16>, vector<8x128xf32> -> vector<8x128xf32>
    %c0_70 = arith.constant 0 : index
    %c0_71 = arith.constant 0 : index
    %c0_72 = arith.constant 0 : index
    %149 = vector.load %arg16[%c0_70, %c0_71, %c0_72] : memref<2x1x128xf32, #tpu.memory_space<vmem>>, vector<1x1x128xf32>
    %150 = vector.shape_cast %149 : vector<1x1x128xf32> to vector<1x128xf32>
    %151 = vector.broadcast %150 : vector<1x128xf32> to vector<8x128xf32>
    %152 = arith.addf %148, %151 : vector<8x128xf32>
    %153 = arith.addf %97, %152 : vector<8x128xf32>
    %c1 = arith.constant 1 : index
    %c0_73 = arith.constant 0 : index
    %c0_74 = arith.constant 0 : index
    %154 = vector.load %arg5[%c1, %c0_73, %c0_74] : memref<2x1x128xf32, #tpu.memory_space<vmem>>, vector<1x1x128xf32>
    %155 = vector.shape_cast %154 : vector<1x1x128xf32> to vector<1x128xf32>
    %c1_75 = arith.constant 1 : index
    %c0_76 = arith.constant 0 : index
    %c0_77 = arith.constant 0 : index
    %156 = vector.load %arg6[%c1_75, %c0_76, %c0_77] : memref<2x1x128xf32, #tpu.memory_space<vmem>>, vector<1x1x128xf32>
    %157 = vector.shape_cast %156 : vector<1x1x128xf32> to vector<1x128xf32>
    %cst_78 = arith.constant dense<0.000000e+00> : vector<8xf32>
    %158 = vector.multi_reduction <add>, %153, %cst_78 [1] : vector<8x128xf32> to vector<8xf32>
    %159 = vector.shape_cast %158 : vector<8xf32> to vector<8x1xf32>
    %cst_79 = arith.constant 1.280000e+02 : f32
    %160 = vector.broadcast %cst_79 : f32 to vector<8x1xf32>
    %161 = arith.divf %159, %160 : vector<8x1xf32>
    %162 = vector.broadcast %161 : vector<8x1xf32> to vector<8x128xf32>
    %163 = arith.subf %153, %162 : vector<8x128xf32>
    %164 = arith.mulf %163, %163 : vector<8x128xf32>
    %cst_80 = arith.constant dense<0.000000e+00> : vector<8xf32>
    %165 = vector.multi_reduction <add>, %164, %cst_80 [1] : vector<8x128xf32> to vector<8xf32>
    %166 = vector.shape_cast %165 : vector<8xf32> to vector<8x1xf32>
    %cst_81 = arith.constant 1.280000e+02 : f32
    %167 = vector.broadcast %cst_81 : f32 to vector<8x1xf32>
    %168 = arith.divf %166, %167 : vector<8x1xf32>
    %169 = vector.broadcast %161 : vector<8x1xf32> to vector<8x128xf32>
    %170 = arith.subf %153, %169 : vector<8x128xf32>
    %cst_82 = arith.constant 9.99999997E-7 : f32
    %171 = vector.broadcast %cst_82 : f32 to vector<8x1xf32>
    %172 = arith.addf %168, %171 : vector<8x1xf32>
    %173 = math.rsqrt %172 : vector<8x1xf32>
    %174 = vector.broadcast %173 : vector<8x1xf32> to vector<8x128xf32>
    %175 = arith.mulf %170, %174 : vector<8x128xf32>
    %176 = vector.broadcast %155 : vector<1x128xf32> to vector<8x128xf32>
    %177 = arith.mulf %175, %176 : vector<8x128xf32>
    %178 = vector.broadcast %157 : vector<1x128xf32> to vector<8x128xf32>
    %179 = arith.addf %177, %178 : vector<8x128xf32>
    %180 = arith.truncf %179 : vector<8x128xf32> to vector<8x128xbf16>
    %c1_83 = arith.constant 1 : index
    %c0_84 = arith.constant 0 : index
    %c0_85 = arith.constant 0 : index
    %181 = vector.load %arg7[%c1_83, %c0_84, %c0_85] : memref<2x128x384xbf16, #tpu.memory_space<vmem>>, vector<1x128x384xbf16>
    %182 = vector.shape_cast %181 : vector<1x128x384xbf16> to vector<128x384xbf16>
    %cst_86 = arith.constant dense<0.000000e+00> : vector<8x384xf32>
    %183 = tpu.matmul %180, %182, %cst_86 {dimension_numbers = #tpu.dot_dimension_numbers<[1], [0], [0], [1], [0, 0, 1, 1], [], []>} : vector<8x128xbf16>, vector<128x384xbf16>, vector<8x384xf32> -> vector<8x384xf32>
    %c1_87 = arith.constant 1 : index
    %c0_88 = arith.constant 0 : index
    %c0_89 = arith.constant 0 : index
    %184 = vector.load %arg8[%c1_87, %c0_88, %c0_89] : memref<2x1x384xf32, #tpu.memory_space<vmem>>, vector<1x1x384xf32>
    %185 = vector.shape_cast %184 : vector<1x1x384xf32> to vector<1x384xf32>
    %186 = vector.broadcast %185 : vector<1x384xf32> to vector<8x384xf32>
    %187 = arith.addf %183, %186 : vector<8x384xf32>
    %188 = arith.truncf %187 : vector<8x384xf32> to vector<8x384xbf16>
    %189 = vector.extract_strided_slice %188 {offsets = [0, 0], sizes = [8, 128], strides = [1, 1]} : vector<8x384xbf16> to vector<8x128xbf16>
    %190 = vector.extract_strided_slice %188 {offsets = [0, 128], sizes = [8, 128], strides = [1, 1]} : vector<8x384xbf16> to vector<8x128xbf16>
    %191 = vector.extract_strided_slice %188 {offsets = [0, 256], sizes = [8, 128], strides = [1, 1]} : vector<8x384xbf16> to vector<8x128xbf16>
    %c1_90 = arith.constant 1 : index
    %c0_91 = arith.constant 0 : index
    %c0_92 = arith.constant 0 : index
    %192 = vector.load %arg9[%c1_90, %c0_91, %c0_92] : memref<2x128x128xbf16, #tpu.memory_space<vmem>>, vector<1x128x128xbf16>
    %193 = vector.shape_cast %192 : vector<1x128x128xbf16> to vector<128x128xbf16>
    %cst_93 = arith.constant 0.000000e+00 : f32
    %194 = vector.broadcast %cst_93 : f32 to vector<8x128xf32>
    %195 = vector.extract_strided_slice %189 {offsets = [0, 0], sizes = [8, 64], strides = [1, 1]} : vector<8x128xbf16> to vector<8x64xbf16>
    %196 = vector.extract_strided_slice %190 {offsets = [0, 0], sizes = [8, 64], strides = [1, 1]} : vector<8x128xbf16> to vector<8x64xbf16>
    %197 = vector.extract_strided_slice %191 {offsets = [0, 0], sizes = [8, 64], strides = [1, 1]} : vector<8x128xbf16> to vector<8x64xbf16>
    %cst_94 = arith.constant dense<0.000000e+00> : vector<8x8xf32>
    %198 = tpu.matmul %195, %196, %cst_94 {dimension_numbers = #tpu.dot_dimension_numbers<[1], [1], [0], [0], [0, 0, 1, 0], [], []>} : vector<8x64xbf16>, vector<8x64xbf16>, vector<8x8xf32> -> vector<8x8xf32>
    %199 = arith.addf %198, %9 : vector<8x8xf32>
    %cst_95 = arith.constant dense<0xFF800000> : vector<8xf32>
    %200 = vector.multi_reduction <maximumf>, %199, %cst_95 [1] : vector<8x8xf32> to vector<8xf32>
    %201 = vector.shape_cast %200 : vector<8xf32> to vector<8x1xf32>
    %202 = vector.broadcast %201 : vector<8x1xf32> to vector<8x8xf32>
    %203 = arith.subf %199, %202 : vector<8x8xf32>
    %204 = math.exp %203 : vector<8x8xf32>
    %cst_96 = arith.constant dense<0.000000e+00> : vector<8xf32>
    %205 = vector.multi_reduction <add>, %204, %cst_96 [1] : vector<8x8xf32> to vector<8xf32>
    %206 = vector.shape_cast %205 : vector<8xf32> to vector<8x1xf32>
    %207 = tpu.reciprocal %206 {approx = true} : vector<8x1xf32> -> vector<8x1xf32>
    %208 = vector.broadcast %207 : vector<8x1xf32> to vector<8x8xf32>
    %209 = arith.mulf %204, %208 : vector<8x8xf32>
    %210 = arith.truncf %209 : vector<8x8xf32> to vector<8x8xbf16>
    %cst_97 = arith.constant dense<0.000000e+00> : vector<8x64xf32>
    %211 = tpu.matmul %210, %197, %cst_97 {dimension_numbers = #tpu.dot_dimension_numbers<[1], [0], [0], [1], [0, 0, 1, 1], [], []>} : vector<8x8xbf16>, vector<8x64xbf16>, vector<8x64xf32> -> vector<8x64xf32>
    %212 = arith.truncf %211 : vector<8x64xf32> to vector<8x64xbf16>
    %213 = vector.extract_strided_slice %193 {offsets = [0, 0], sizes = [64, 128], strides = [1, 1]} : vector<128x128xbf16> to vector<64x128xbf16>
    %cst_98 = arith.constant dense<0.000000e+00> : vector<8x128xf32>
    %214 = tpu.matmul %212, %213, %cst_98 {dimension_numbers = #tpu.dot_dimension_numbers<[1], [0], [0], [1], [0, 0, 1, 1], [], []>} : vector<8x64xbf16>, vector<64x128xbf16>, vector<8x128xf32> -> vector<8x128xf32>
    %215 = arith.addf %194, %214 : vector<8x128xf32>
    %216 = vector.extract_strided_slice %189 {offsets = [0, 64], sizes = [8, 64], strides = [1, 1]} : vector<8x128xbf16> to vector<8x64xbf16>
    %217 = vector.extract_strided_slice %190 {offsets = [0, 64], sizes = [8, 64], strides = [1, 1]} : vector<8x128xbf16> to vector<8x64xbf16>
    %218 = vector.extract_strided_slice %191 {offsets = [0, 64], sizes = [8, 64], strides = [1, 1]} : vector<8x128xbf16> to vector<8x64xbf16>
    %cst_99 = arith.constant dense<0.000000e+00> : vector<8x8xf32>
    %219 = tpu.matmul %216, %217, %cst_99 {dimension_numbers = #tpu.dot_dimension_numbers<[1], [1], [0], [0], [0, 0, 1, 0], [], []>} : vector<8x64xbf16>, vector<8x64xbf16>, vector<8x8xf32> -> vector<8x8xf32>
    %220 = arith.addf %219, %9 : vector<8x8xf32>
    %cst_100 = arith.constant dense<0xFF800000> : vector<8xf32>
    %221 = vector.multi_reduction <maximumf>, %220, %cst_100 [1] : vector<8x8xf32> to vector<8xf32>
    %222 = vector.shape_cast %221 : vector<8xf32> to vector<8x1xf32>
    %223 = vector.broadcast %222 : vector<8x1xf32> to vector<8x8xf32>
    %224 = arith.subf %220, %223 : vector<8x8xf32>
    %225 = math.exp %224 : vector<8x8xf32>
    %cst_101 = arith.constant dense<0.000000e+00> : vector<8xf32>
    %226 = vector.multi_reduction <add>, %225, %cst_101 [1] : vector<8x8xf32> to vector<8xf32>
    %227 = vector.shape_cast %226 : vector<8xf32> to vector<8x1xf32>
    %228 = tpu.reciprocal %227 {approx = true} : vector<8x1xf32> -> vector<8x1xf32>
    %229 = vector.broadcast %228 : vector<8x1xf32> to vector<8x8xf32>
    %230 = arith.mulf %225, %229 : vector<8x8xf32>
    %231 = arith.truncf %230 : vector<8x8xf32> to vector<8x8xbf16>
    %cst_102 = arith.constant dense<0.000000e+00> : vector<8x64xf32>
    %232 = tpu.matmul %231, %218, %cst_102 {dimension_numbers = #tpu.dot_dimension_numbers<[1], [0], [0], [1], [0, 0, 1, 1], [], []>} : vector<8x8xbf16>, vector<8x64xbf16>, vector<8x64xf32> -> vector<8x64xf32>
    %233 = arith.truncf %232 : vector<8x64xf32> to vector<8x64xbf16>
    %234 = vector.extract_strided_slice %193 {offsets = [64, 0], sizes = [64, 128], strides = [1, 1]} : vector<128x128xbf16> to vector<64x128xbf16>
    %cst_103 = arith.constant dense<0.000000e+00> : vector<8x128xf32>
    %235 = tpu.matmul %233, %234, %cst_103 {dimension_numbers = #tpu.dot_dimension_numbers<[1], [0], [0], [1], [0, 0, 1, 1], [], []>} : vector<8x64xbf16>, vector<64x128xbf16>, vector<8x128xf32> -> vector<8x128xf32>
    %236 = arith.addf %215, %235 : vector<8x128xf32>
    %237 = arith.addf %153, %236 : vector<8x128xf32>
    %c1_104 = arith.constant 1 : index
    %c0_105 = arith.constant 0 : index
    %c0_106 = arith.constant 0 : index
    %238 = vector.load %arg10[%c1_104, %c0_105, %c0_106] : memref<2x1x128xf32, #tpu.memory_space<vmem>>, vector<1x1x128xf32>
    %239 = vector.shape_cast %238 : vector<1x1x128xf32> to vector<1x128xf32>
    %240 = vector.broadcast %239 : vector<1x128xf32> to vector<8x128xf32>
    %241 = arith.addf %237, %240 : vector<8x128xf32>
    %c1_107 = arith.constant 1 : index
    %c0_108 = arith.constant 0 : index
    %c0_109 = arith.constant 0 : index
    %242 = vector.load %arg11[%c1_107, %c0_108, %c0_109] : memref<2x1x128xf32, #tpu.memory_space<vmem>>, vector<1x1x128xf32>
    %243 = vector.shape_cast %242 : vector<1x1x128xf32> to vector<1x128xf32>
    %c1_110 = arith.constant 1 : index
    %c0_111 = arith.constant 0 : index
    %c0_112 = arith.constant 0 : index
    %244 = vector.load %arg12[%c1_110, %c0_111, %c0_112] : memref<2x1x128xf32, #tpu.memory_space<vmem>>, vector<1x1x128xf32>
    %245 = vector.shape_cast %244 : vector<1x1x128xf32> to vector<1x128xf32>
    %cst_113 = arith.constant dense<0.000000e+00> : vector<8xf32>
    %246 = vector.multi_reduction <add>, %241, %cst_113 [1] : vector<8x128xf32> to vector<8xf32>
    %247 = vector.shape_cast %246 : vector<8xf32> to vector<8x1xf32>
    %cst_114 = arith.constant 1.280000e+02 : f32
    %248 = vector.broadcast %cst_114 : f32 to vector<8x1xf32>
    %249 = arith.divf %247, %248 : vector<8x1xf32>
    %250 = vector.broadcast %249 : vector<8x1xf32> to vector<8x128xf32>
    %251 = arith.subf %241, %250 : vector<8x128xf32>
    %252 = arith.mulf %251, %251 : vector<8x128xf32>
    %cst_115 = arith.constant dense<0.000000e+00> : vector<8xf32>
    %253 = vector.multi_reduction <add>, %252, %cst_115 [1] : vector<8x128xf32> to vector<8xf32>
    %254 = vector.shape_cast %253 : vector<8xf32> to vector<8x1xf32>
    %cst_116 = arith.constant 1.280000e+02 : f32
    %255 = vector.broadcast %cst_116 : f32 to vector<8x1xf32>
    %256 = arith.divf %254, %255 : vector<8x1xf32>
    %257 = vector.broadcast %249 : vector<8x1xf32> to vector<8x128xf32>
    %258 = arith.subf %241, %257 : vector<8x128xf32>
    %cst_117 = arith.constant 9.99999997E-7 : f32
    %259 = vector.broadcast %cst_117 : f32 to vector<8x1xf32>
    %260 = arith.addf %256, %259 : vector<8x1xf32>
    %261 = math.rsqrt %260 : vector<8x1xf32>
    %262 = vector.broadcast %261 : vector<8x1xf32> to vector<8x128xf32>
    %263 = arith.mulf %258, %262 : vector<8x128xf32>
    %264 = vector.broadcast %243 : vector<1x128xf32> to vector<8x128xf32>
    %265 = arith.mulf %263, %264 : vector<8x128xf32>
    %266 = vector.broadcast %245 : vector<1x128xf32> to vector<8x128xf32>
    %267 = arith.addf %265, %266 : vector<8x128xf32>
    %268 = arith.truncf %267 : vector<8x128xf32> to vector<8x128xbf16>
    %c1_118 = arith.constant 1 : index
    %c0_119 = arith.constant 0 : index
    %c0_120 = arith.constant 0 : index
    %269 = vector.load %arg13[%c1_118, %c0_119, %c0_120] : memref<2x128x256xbf16, #tpu.memory_space<vmem>>, vector<1x128x256xbf16>
    %270 = vector.shape_cast %269 : vector<1x128x256xbf16> to vector<128x256xbf16>
    %cst_121 = arith.constant dense<0.000000e+00> : vector<8x256xf32>
    %271 = tpu.matmul %268, %270, %cst_121 {dimension_numbers = #tpu.dot_dimension_numbers<[1], [0], [0], [1], [0, 0, 1, 1], [], []>} : vector<8x128xbf16>, vector<128x256xbf16>, vector<8x256xf32> -> vector<8x256xf32>
    %c1_122 = arith.constant 1 : index
    %c0_123 = arith.constant 0 : index
    %c0_124 = arith.constant 0 : index
    %272 = vector.load %arg14[%c1_122, %c0_123, %c0_124] : memref<2x1x256xf32, #tpu.memory_space<vmem>>, vector<1x1x256xf32>
    %273 = vector.shape_cast %272 : vector<1x1x256xf32> to vector<1x256xf32>
    %274 = vector.broadcast %273 : vector<1x256xf32> to vector<8x256xf32>
    %275 = arith.addf %271, %274 : vector<8x256xf32>
    %cst_125 = arith.constant 5.000000e-01 : f32
    %276 = vector.broadcast %cst_125 : f32 to vector<8x256xf32>
    %277 = arith.mulf %276, %275 : vector<8x256xf32>
    %cst_126 = arith.constant 4.471500e-02 : f32
    %278 = vector.broadcast %cst_126 : f32 to vector<8x256xf32>
    %279 = arith.mulf %278, %275 : vector<8x256xf32>
    %280 = arith.mulf %279, %275 : vector<8x256xf32>
    %281 = arith.mulf %280, %275 : vector<8x256xf32>
    %282 = arith.addf %275, %281 : vector<8x256xf32>
    %cst_127 = arith.constant 0.797884583 : f32
    %283 = vector.broadcast %cst_127 : f32 to vector<8x256xf32>
    %284 = arith.mulf %283, %282 : vector<8x256xf32>
    %285 = math.tanh %284 : vector<8x256xf32>
    %cst_128 = arith.constant 1.000000e+00 : f32
    %286 = vector.broadcast %cst_128 : f32 to vector<8x256xf32>
    %287 = arith.addf %286, %285 : vector<8x256xf32>
    %288 = arith.mulf %277, %287 : vector<8x256xf32>
    %289 = arith.truncf %288 : vector<8x256xf32> to vector<8x256xbf16>
    %c1_129 = arith.constant 1 : index
    %c0_130 = arith.constant 0 : index
    %c0_131 = arith.constant 0 : index
    %290 = vector.load %arg15[%c1_129, %c0_130, %c0_131] : memref<2x256x128xbf16, #tpu.memory_space<vmem>>, vector<1x256x128xbf16>
    %291 = vector.shape_cast %290 : vector<1x256x128xbf16> to vector<256x128xbf16>
    %cst_132 = arith.constant dense<0.000000e+00> : vector<8x128xf32>
    %292 = tpu.matmul %289, %291, %cst_132 {dimension_numbers = #tpu.dot_dimension_numbers<[1], [0], [0], [1], [0, 0, 1, 1], [], []>} : vector<8x256xbf16>, vector<256x128xbf16>, vector<8x128xf32> -> vector<8x128xf32>
    %c1_133 = arith.constant 1 : index
    %c0_134 = arith.constant 0 : index
    %c0_135 = arith.constant 0 : index
    %293 = vector.load %arg16[%c1_133, %c0_134, %c0_135] : memref<2x1x128xf32, #tpu.memory_space<vmem>>, vector<1x1x128xf32>
    %294 = vector.shape_cast %293 : vector<1x1x128xf32> to vector<1x128xf32>
    %295 = vector.broadcast %294 : vector<1x128xf32> to vector<8x128xf32>
    %296 = arith.addf %292, %295 : vector<8x128xf32>
    %297 = arith.addf %241, %296 : vector<8x128xf32>
    %c0_136 = arith.constant 0 : index
    %c0_137 = arith.constant 0 : index
    %298 = vector.load %arg17[%c0_136, %c0_137] : memref<8x128xf32, #tpu.memory_space<vmem>>, vector<8x128xf32>
    tpu.vector_store %arg17[%c0_136, %c0_137], %297 {strides = array<i32>} : memref<8x128xf32, #tpu.memory_space<vmem>>, vector<8x128xf32>,
    return
  }
}

</mosaic_0001>

<bundles_post_ra>
// kernel: tpu_custom_call.1
= control target key start
LH: loop header
LB: loop body
LE: loop exit
PB: predicated region body
PF: predicated region fallthrough
CT: control target
= control target key end

     0   :  { %s3556_s0 = inlined_call_operand.hbm [shape: bf16[8,256], index: 0, kind: input, shape index: {}]   ;;  %s3557_s1 = inlined_call_operand.hbm [shape: bf16[256,128], index: 1, kind: input, shape index: {}]   ;;  %s3558_s2 = inlined_call_operand.hbm [shape: f32[1,128], index: 2, kind: input, shape index: {}]   ;;  %s3559_s3 = inlined_call_operand.hbm [shape: f32[4,128], index: 3, kind: input, shape index: {}]   ;;  %s3560_s4 = inlined_call_operand.hbm [shape: f32[8,8], index: 4, kind: input, shape index: {}]   ;;  %s3561_s5 = inlined_call_operand.hbm [shape: f32[2,1,128], index: 5, kind: input, shape index: {}]   ;;  %s3562_s6 = inlined_call_operand.hbm [shape: f32[2,1,128], index: 6, kind: input, shape index: {}]   ;;  %s3563_s7 = inlined_call_operand.hbm [shape: bf16[2,128,384], index: 7, kind: input, shape index: {}]   ;;  %s3564_s8 = inlined_call_operand.vmem [shape: f32[2,1,384], index: 8, kind: input, shape index: {}]   ;;  %s3565_s9 = inlined_call_operand.hbm [shape: bf16[2,128,128], index: 9, kind: input, shape index: {}]   ;;  %s3566_s10 = inlined_call_operand.hbm [shape: f32[2,1,128], index: 10, kind: input, shape index: {}]   ;;  %s3567_s11 = inlined_call_operand.hbm [shape: f32[2,1,128], index: 11, kind: input, shape index: {}]   ;;  %s3568_s12 = inlined_call_operand.hbm [shape: f32[2,1,128], index: 12, kind: input, shape index: {}]   ;;  %s3569_s13 = inlined_call_operand.hbm [shape: bf16[2,128,256], index: 13, kind: input, shape index: {}]   ;;  %s3570_s14 = inlined_call_operand.vmem [shape: f32[2,1,256], index: 14, kind: input, shape index: {}]   ;;  %s3571_s15 = inlined_call_operand.hbm [shape: bf16[2,256,128], index: 15, kind: input, shape index: {}]   ;;  %s3572_s16 = inlined_call_operand.vmem [shape: f32[2,1,128], index: 16, kind: input, shape index: {}]   ;;  %s3573_s17 = inlined_call_operand.hbm [shape: f32[8,128], index: 17, kind: output, shape index: {}]  }
   0x1   :  { %3574 = sst [smem:[#allocation35_spill]] %s3556_s0 }
   0x2   :  { %3575 = sst [smem:[#allocation36_spill]] %s3557_s1 }
   0x3   :  { %3576 = sst [smem:[#allocation37_spill]] %s3573_s17 }
   0x4   :  { %22 = vsyncpa [#allocation3], 0 }
   0x5   :  { %23 = vsyncpa [#allocation6], 0 }
   0x6   :  { %24 = vsyncpa [#allocation9], 0 }
   0x7   :  { %25 = vsyncpa [#allocation12], 0 }
   0x8   :  { %26 = vsyncpa [#allocation15], 0 }
   0x9   :  { %27 = vsyncpa [#allocation18], 0 }
   0xa   :  { %28 = vsyncpa [#allocation21], 0 }
   0xb   :  { %29 = vsyncpa [#allocation24], 0  ;;  %s3577_s26 = sld [smem:[#allocation36_spill]] }
  0x11   :  { %s46_s27 = sshll.u32 %s3577_s26, 4  ;;  %s47_s27 = int_to_ptr.hbm [resolvable:$true] %s46_s27 }
  0x12   :  { %30 = vsyncpa [#allocation4], 0  ;;  %s3264_s28 = smov [#allocation5]   ;;  %s71_s18 = sshll.u32 %s3559_s3, 4  ;;  %s72_s18 = int_to_ptr.hbm [resolvable:$true] %s71_s18 }
  0x13   :  { %s48_s29 = sshll.u32 %s3264_s28, 4  ;;  %s3265_s19 = smov 64   ;;  %s49_s29 = int_to_ptr.vmem [resolvable:$true] %s48_s29 }
  0x14   :  { %s3266_s1 = smov 4   ;;  %s3267_s20 = smov [#allocation8]  }
  0x15   :  { %54 = dma.hbm_to_vmem [thread:$0]  %s47_s27, 2048, %s49_s29, [#allocation6], %s3265_s19, %s3265_s19, %s3266_s1  }
  0x16   :  { %s73_s21 = sshll.u32 %s3267_s20, 4  ;;  %s92_s24 = sshll.u32 %s3561_s5, 4  ;;  %s74_s21 = int_to_ptr.vmem [resolvable:$true] %s73_s21  ;;  %s93_s24 = int_to_ptr.hbm [resolvable:$true] %s92_s24 }
  0x17   :  { %76 = dma.hbm_to_vmem [thread:$0]  %s72_s18, 64, %s74_s21, [#allocation9]  }
  0x18   :  { %s3268_s25 = smov [#allocation11]   ;;  %s118_s0 = sshll.u32 %s3563_s7, 4  ;;  %s119_s0 = int_to_ptr.hbm [resolvable:$true] %s118_s0 }
  0x19   :  { %s94_s26 = sshll.u32 %s3268_s25, 4  ;;  %s3269_s30 = smov 16   ;;  %s95_s26 = int_to_ptr.vmem [resolvable:$true] %s94_s26 }
  0x1a   :  { %s3270_s17 = smov 1   ;;  %s3271_s27 = smov [#allocation14]  }
  0x1b   :  { %100 = dma.hbm_to_vmem [thread:$0]  %s93_s24, 32, %s95_s26, [#allocation12], %s3269_s30, %s3269_s30, %s3270_s17  }
  0x1c   :  { %s120_s29 = sshll.u32 %s3271_s27, 4  ;;  %s3272_s5 = smov 192   ;;  %s121_s29 = int_to_ptr.vmem [resolvable:$true] %s120_s29 }
  0x1d   :  { %s3273_s20 = smov 12   ;;  %s146_s22 = sshll.u32 %s3566_s10, 4  ;;  %s147_s22 = int_to_ptr.hbm [resolvable:$true] %s146_s22 }
  0x1e   :  { %126 = dma.hbm_to_vmem [thread:$0]  %s119_s0, 6144, %s121_s29, [#allocation15], %s3272_s5, %s3272_s5, %s3273_s20  }
  0x1f   :  { %s3274_s23 = smov [#allocation17]   ;;  %s172_s28 = sshll.u32 %s3568_s12, 4  ;;  %s173_s28 = int_to_ptr.hbm [resolvable:$true] %s172_s28 }
  0x20   :  { %s148_s7 = sshll.u32 %s3274_s23, 4  ;;  %s3275_s24 = smov [#allocation20]   ;;  %s149_s7 = int_to_ptr.vmem [resolvable:$true] %s148_s7 }
  0x21   :  { %154 = dma.hbm_to_vmem [thread:$0]  %s147_s22, 32, %s149_s7, [#allocation18], %s3269_s30, %s3269_s30, %s3270_s17  }
  0x22   :  { %s174_s26 = sshll.u32 %s3275_s24, 4  ;;  %s3578_s29 = sld [smem:[#allocation35_spill]]  ;;  %s175_s26 = int_to_ptr.vmem [resolvable:$true] %s174_s26 }
  0x23   :  { %180 = dma.hbm_to_vmem [thread:$0]  %s173_s28, 32, %s175_s26, [#allocation21], %s3269_s30, %s3269_s30, %s3270_s17  }
  0x24   :  { %s60_s12 = sshll.u32 %s3558_s2, 4  ;;  %s3276_s18 = smov [#allocation2]   ;;  %s61_s12 = int_to_ptr.hbm [resolvable:$true] %s60_s12 }
  0x25   :  { %s38_s21 = sshll.u32 %s3276_s18, 4  ;;  %s3277_s22 = smov [#allocation7]   ;;  %s39_s21 = int_to_ptr.vmem [resolvable:$true] %s38_s21 }
  0x26   :  { %s62_s23 = sshll.u32 %s3277_s22, 4  ;;  %s82_s3 = sshll.u32 %s3560_s4, 4  ;;  %s63_s23 = int_to_ptr.vmem [resolvable:$true] %s62_s23  ;;  %s83_s3 = int_to_ptr.hbm [resolvable:$true] %s82_s3 }
  0x27   :  { %65 = dma.hbm_to_vmem [thread:$0]  %s61_s12, 16, %s63_s23, [#allocation6]  }
  0x28   :  { %s36_s5 = sshll.u32 %s3578_s29, 4  ;;  %s105_s26 = sshll.u32 %s3562_s6, 4  ;;  %s37_s5 = int_to_ptr.hbm [resolvable:$true] %s36_s5  ;;  %s106_s26 = int_to_ptr.hbm [resolvable:$true] %s105_s26 }
  0x29   :  { %41 = dma.hbm_to_vmem [thread:$0]  %s37_s5, 128, %s39_s21, [#allocation3]  }
  0x2a   :  { %s3278_s0 = smov [#allocation10]   ;;  %s3279_s27 = smov [#allocation13]  }
  0x2b   :  { %s84_s2 = sshll.u32 %s3278_s0, 4  ;;  %s107_s29 = sshll.u32 %s3279_s27, 4  ;;  %s85_s2 = int_to_ptr.vmem [resolvable:$true] %s84_s2  ;;  %s108_s29 = int_to_ptr.vmem [resolvable:$true] %s107_s29 }
  0x2c   :  { %87 = dma.hbm_to_vmem [thread:$0]  %s83_s3, 128, %s85_s2, [#allocation9]  }
  0x2d   :  { %s133_s20 = sshll.u32 %s3565_s9, 4  ;;  %s159_s6 = sshll.u32 %s3567_s11, 4  ;;  %s134_s20 = int_to_ptr.hbm [resolvable:$true] %s133_s20  ;;  %s160_s6 = int_to_ptr.hbm [resolvable:$true] %s159_s6 }
  0x2e   :  { %113 = dma.hbm_to_vmem [thread:$0]  %s106_s26, 32, %s108_s29, [#allocation12], %s3269_s30, %s3269_s30, %s3270_s17  }
  0x2f   :  { %s3280_s18 = smov [#allocation16]   ;;  %s3281_s22 = smov [#allocation19]  }
  0x30   :  { %s135_s21 = sshll.u32 %s3280_s18, 4  ;;  %s161_s9 = sshll.u32 %s3281_s22, 4  ;;  %s136_s21 = int_to_ptr.vmem [resolvable:$true] %s135_s21  ;;  %s162_s9 = int_to_ptr.vmem [resolvable:$true] %s161_s9 }
  0x31   :  { %141 = dma.hbm_to_vmem [thread:$0]  %s134_s20, 2048, %s136_s21, [#allocation15], %s3265_s19, %s3265_s19, %s3266_s1  }
  0x32   :  { %s185_s25 = sshll.u32 %s3569_s13, 4  ;;  %s3282_s11 = smov [#allocation22]   ;;  %s186_s25 = int_to_ptr.hbm [resolvable:$true] %s185_s25 }
  0x33   :  { %167 = dma.hbm_to_vmem [thread:$0]  %s160_s6, 32, %s162_s9, [#allocation18], %s3269_s30, %s3269_s30, %s3270_s17  }
  0x34   :  { %s187_s3 = sshll.u32 %s3282_s11, 4  ;;  %s200_s26 = sshll.u32 %s3571_s15, 4  ;;  %s188_s3 = int_to_ptr.vmem [resolvable:$true] %s187_s3  ;;  %s201_s26 = int_to_ptr.hbm [resolvable:$true] %s200_s26 }
  0x35   :  { %s3283_s0 = smov 128   ;;  %s3284_s2 = smov 8  }
  0x36   :  { %193 = dma.hbm_to_vmem [thread:$0]  %s186_s25, 4096, %s188_s3, [#allocation21], %s3283_s0, %s3283_s0, %s3284_s2  }
  0x37   :  { %s3285_s27 = smov [#allocation23]  }
  0x38   :  { %s202_s29 = sshll.u32 %s3285_s27, 4  ;;  %s203_s29 = int_to_ptr.vmem [resolvable:$true] %s202_s29 }
  0x39   :  { %208 = dma.hbm_to_vmem [thread:$0]  %s201_s26, 4096, %s203_s29, [#allocation24], %s3265_s19, %s3265_s19, %s3266_s1  }
  0x3a   :  { %3246 = dma.done.wait [#allocation3], 128  }
  0x3b   :  { %3247 = vsyncadd [#allocation3], 4294967168 }
  0x3c   :  { %3248 = dma.done.wait [#allocation6], 2064  }
  0x3d   :  { %3249 = vsyncadd [#allocation6], 4294965232 }
  0x3e   :  { %3250 = dma.done.wait [#allocation9], 192  }
  0x3f   :  { %3251 = vsyncadd [#allocation9], 4294967104 }
  0x40   :  { %3252 = dma.done.wait [#allocation12], 64  }
  0x41   :  { %3253 = vsyncadd [#allocation12], 4294967232 }
  0x42   :  { %3254 = dma.done.wait [#allocation15], 8192  }
  0x43   :  { %3255 = vsyncadd [#allocation15], 4294959104 }
  0x44   :  { %3256 = dma.done.wait [#allocation18], 64  }
  0x45   :  { %3257 = vsyncadd [#allocation18], 4294967232 }
  0x46   :  { %3258 = dma.done.wait [#allocation21], 4128  }
  0x47   :  { %3259 = vsyncadd [#allocation21], 4294963168 }
  0x48   :  { %3260 = dma.done.wait [#allocation24], 4096  }
  0x49   :  { %3261 = vsyncadd [#allocation24], 4294963200  ;;  %v2678_v0 = vld [vmem:[#allocation5 + $0x38] sm:$0xff]  ;;  %v2677_v2 = vld [vmem:[#allocation5 + $0x30] sm:$0xff]  ;;  %vm438_vm0 = vcmask 1043456   ;;  %v3286_v32 = vmov 128.0  }
  0x4a   :  { %v2686_v1 = vld [vmem:[#allocation5 + $0x78] sm:$0xff]  ;;  %408 = vmatpush.bf16.msra.mxu0 %v2678_v0  ;;  %v2685_v3 = vld [vmem:[#allocation5 + $0x70] sm:$0xff]  ;;  %v2676_v4 = vld [vmem:[#allocation5 + $0x28] sm:$0xff]  ;;  %2852 = vrcp.f32 %v3286_v32  ;;  %vm708_vm5 = vcmask 523264   ;;  %vm728_vm6 = vcmask 64512   ;;  %s3287_s12 = smov [#allocation25]  }
  0x4b   :  { %421 = vmatpush.bf16.msra.mxu1 %v2686_v1  ;;  %v2684_v5 = vld [vmem:[#allocation5 + $0x68] sm:$0xff]  ;;  %v2675_v6 = vld [vmem:[#allocation5 + $0x20] sm:$0xff]  ;;  %v2674_v8 = vld [vmem:[#allocation5 + $0x18] sm:$0xff]  ;;  %s2061_s6 = sshll.u32 %s3287_s12, 4  ;;  %s3579_s22 = sld [smem:[#allocation37_spill]]  ;;  %s2062_s6 = int_to_ptr.vmem [resolvable:$true] %s2061_s6 }
  0x4c   :  { %v2683_v7 = vld [vmem:[#allocation5 + $0x60] sm:$0xff]  ;;  %v2682_v9 = vld [vmem:[#allocation5 + $0x58] sm:$0xff]  ;;  %v2673_v10 = vld [vmem:[#allocation5 + $0x10] sm:$0xff] }
  0x4d   :  { %v2681_v11 = vld [vmem:[#allocation5 + $0x50] sm:$0xff]  ;;  %v2672_v12 = vld [vmem:[#allocation5 + $0x8] sm:$0xff]  ;;  %v268_v14 = vld [vmem:[#allocation2] sm:$0xff] }
  0x4e   :  { %409 = vmatpush.bf16.msra.mxu0 %v2677_v2  ;;  %v2680_v13 = vld [vmem:[#allocation5 + $0x48] sm:$0xff]  ;;  %v306_v15 = vunpack.c.l.b16 %v268_v14  ;;  %v307_v16 = vunpack.c.h.b16 %v268_v14  ;;  %v2671_v17 = vld [vmem:[#allocation5] sm:$0xff]  ;;  %v2230_v33 = vld [vmem:[#allocation14 + $0xa8] sm:$0xf] }
  0x4f   :  { %422 = vmatpush.bf16.msra.mxu1 %v2685_v3  ;;  %v2679_v18 = vld [vmem:[#allocation5 + $0x40] sm:$0xff]  ;;  %v2232_v37 = vld [vmem:[#allocation14 + $0xb4] sm:$0xf0]  ;;  %v2710_v39 = vld [vmem:[#allocation14 + $0xb8] sm:$0xf0] }
  0x50   :  { %v308_v19 = vpack.c.b16 %v306_v15, %v306_v15  ;;  %v309_v20 = vpack.c.b16 %v307_v16, %v307_v16  ;;  %v434_v21 = vld [vmem:[#allocation8] sm:$0xf]  ;;  %v2839_v22 = vld [vmem:[#allocation7] ss:$0 sm:$0xff]  ;;  %v2709_v34 = vld [vmem:[#allocation14 + $0xb0] sm:$0xf0]  ;;  %v2853_v42 = vpop.eup %2852 }
  0x51   :  { %v436_v23 = vrot.slane %v434_v21, 4  ;;  %v2708_v35 = vld [vmem:[#allocation14 + $0xac] sm:$0xf]  ;;  %v2231_v36 = vor.u32 %v2709_v34, %v2230_v33  ;;  %v2238_v38 = vld [vmem:[#allocation14 + $0xb0] sm:$0xf]  ;;  %v447_v43 = vmul.f32 128.0, %v2853_v42  ;;  %vm451_vm1 = vweird.f32 %v2853_v42 }
  0x52   :  { %410 = vmatpush.bf16.msra.mxu0 %v2676_v4  ;;  %v2235_v40 = vor.u32 %v2708_v35, %v2232_v37  ;;  %v2239_v41 = vor.u32 %v2710_v39, %v2238_v38  ;;  %v2218_v52 = vld [vmem:[#allocation14 + $0x90] sm:$0xf]  ;;  %v2706_v53 = vld [vmem:[#allocation14 + $0x98] sm:$0xf0]  ;;  %v2705_v54 = vld [vmem:[#allocation14 + $0x94] sm:$0xf] }
  0x53   :  { %423 = vmatpush.bf16.msra.mxu1 %v2684_v5  ;;  %v439_v27 = vsel %vm438_vm0, %v434_v21, %v436_v23  ;;  %648 = vmatpush.bf16.msra.mxu2 %v2231_v36  ;;  %v448_v44 = vsub.f32 1.0, %v447_v43  ;;  %v2219_v55 = vor.u32 %v2706_v53, %v2218_v52  ;;  %v2220_v56 = vld [vmem:[#allocation14 + $0x9c] sm:$0xf0]  ;;  %v2226_v57 = vld [vmem:[#allocation14 + $0x98] sm:$0xf]  ;;  %s2063_s9 = sshll.u32 %s3579_s22, 4  ;;  %s2064_s9 = int_to_ptr.hbm [resolvable:$true] %s2063_s9 }
  0x54   :  { %661 = vmatpush.bf16.msra.mxu3 %v2235_v40  ;;  %v2707_v58 = vld [vmem:[#allocation14 + $0xa0] sm:$0xf0]  ;;  %v2223_v59 = vor.u32 %v2705_v54, %v2220_v56  ;;  %v2206_v61 = vld [vmem:[#allocation14 + $0x78] sm:$0xf]  ;;  %v2702_v63 = vld [vmem:[#allocation14 + $0x7c] sm:$0xf] }
  0x55   :  { %v449_v45 = vmul.f32 %v2853_v42, %v448_v44  ;;  %v2227_v60 = vor.u32 %v2707_v58, %v2226_v57  ;;  %v2703_v62 = vld [vmem:[#allocation14 + $0x80] sm:$0xf0]  ;;  %v2208_v1 = vld [vmem:[#allocation14 + $0x84] sm:$0xf0]  ;;  %v2214_v2 = vld [vmem:[#allocation14 + $0x80] sm:$0xf] }
  0x56   :  { %411 = vmatpush.bf16.msra.mxu0 %v2675_v6  ;;  %v2207_v0 = vor.u32 %v2703_v62, %v2206_v61  ;;  %v2704_v3 = vld [vmem:[#allocation14 + $0x88] sm:$0xf0]  ;;  %v2211_v4 = vor.u32 %v2702_v63, %v2208_v1  ;;  %v2194_v6 = vld [vmem:[#allocation14 + $0x60] sm:$0xf]  ;;  %v2182_v15 = vld [vmem:[#allocation14 + $0x48] sm:$0xf] }
  0x57   :  { %424 = vmatpush.bf16.msra.mxu1 %v2683_v7  ;;  %v450_v46 = vadd.f32 %v2853_v42, %v449_v45  ;;  %649 = vmatpush.bf16.msra.mxu2 %v2219_v55  ;;  %v2215_v5 = vor.u32 %v2704_v3, %v2214_v2  ;;  %v2700_v7 = vld [vmem:[#allocation14 + $0x68] sm:$0xf0]  ;;  %v2697_v16 = vld [vmem:[#allocation14 + $0x50] sm:$0xf0]  ;;  %v2698_v21 = vld [vmem:[#allocation14 + $0x58] sm:$0xf0] }
  0x58   :  { %662 = vmatpush.bf16.msra.mxu3 %v2223_v59  ;;  %v2158_v34 = vld [vmem:[#allocation14 + $0x18] sm:$0xf]  ;;  %v2691_v35 = vld [vmem:[#allocation14 + $0x20] sm:$0xf0]  ;;  %v2690_v36 = vld [vmem:[#allocation14 + $0x1c] sm:$0xf] }
  0x59   :  { %v3448_v47 = vsel %vm451_vm1, %v2853_v42, %v450_v46  ;;  %v2159_v37 = vor.u32 %v2691_v35, %v2158_v34  ;;  %v2160_v38 = vld [vmem:[#allocation14 + $0x24] sm:$0xf0]  ;;  %v2166_v39 = vld [vmem:[#allocation14 + $0x20] sm:$0xf]  ;;  %v2692_v40 = vld [vmem:[#allocation14 + $0x28] sm:$0xf0] }
  0x5a   :  { %412 = vmatpush.bf16.msra.mxu0 %v2674_v8  ;;  %v2699_v8 = vld [vmem:[#allocation14 + $0x64] sm:$0xf]  ;;  %v2167_v42 = vor.u32 %v2692_v40, %v2166_v39  ;;  %v2146_v43 = vld [vmem:[#allocation14] sm:$0xf]  ;;  %v2688_v44 = vld [vmem:[#allocation14 + $0x8] sm:$0xf0] }
  0x5b   :  { %425 = vmatpush.bf16.msra.mxu1 %v2682_v9  ;;  %650 = vmatpush.bf16.msra.mxu2 %v2207_v0  ;;  %v2195_v9 = vor.u32 %v2700_v7, %v2194_v6  ;;  %v2687_v45 = vld [vmem:[#allocation14 + $0x4] sm:$0xf]  ;;  %v2147_v46 = vor.u32 %v2688_v44, %v2146_v43  ;;  %v2840_v63 = vld [vmem:[#allocation11] ss:$0 sm:$0xff]  ;;  %v2841_v2 = vld [vmem:[#allocation13] ss:$0 sm:$0xff] }
  0x5c   :  { %663 = vmatpush.bf16.msra.mxu3 %v2211_v4  ;;  %v512_v6 = vld [vmem:[%s3564_s8] sm:$0x7] }
  0x5d   :  { %v516_v7 = vperm.slane %v512_v6, 2 }
  0x5e   :  { %413 = vmatpush.bf16.msra.mxu0 %v2673_v10  ;;  %v2196_v10 = vld [vmem:[#allocation14 + $0x6c] sm:$0xf0] }
  0x5f   :  { %426 = vmatpush.bf16.msra.mxu1 %v2681_v11  ;;  %v2202_v11 = vld [vmem:[#allocation14 + $0x68] sm:$0xf]  ;;  %651 = vmatpush.bf16.msra.mxu2 %v2195_v9 }
  0x62   :  { %414 = vmatpush.bf16.msra.mxu0 %v2672_v12  ;;  %v2701_v12 = vld [vmem:[#allocation14 + $0x70] sm:$0xf0] }
  0x63   :  { %427 = vmatpush.bf16.msra.mxu1 %v2680_v13  ;;  %v2199_v13 = vor.u32 %v2699_v8, %v2196_v10  ;;  %v2203_v14 = vor.u32 %v2701_v12, %v2202_v11  ;;  %v514_v10 = vperm.slane %v512_v6, 0  ;;  %v515_v11 = vperm.slane %v512_v6, 1 }
  0x65   :  { %664 = vmatpush.bf16.msra.mxu3 %v2199_v13 }
  0x66   :  { %415 = vmatpush.bf16.msra.mxu0 %v2671_v17  ;;  %v2696_v17 = vld [vmem:[#allocation14 + $0x4c] sm:$0xf] }
  0x67   :  { %428 = vmatpush.bf16.msra.mxu1 %v2679_v18  ;;  %v2183_v18 = vor.u32 %v2697_v16, %v2182_v15 }
  0x69   :  { %416 = vmatmul.bf16.vlgmr.msra.gmra.mxu0 %v308_v19  ;;  %v2184_v19 = vld [vmem:[#allocation14 + $0x54] sm:$0xf0]  ;;  %652 = vmatpush.bf16.msra.mxu2 %v2183_v18 }
  0x6a   :  { %429 = vmatmul.bf16.vlgmr.msra.gmra.mxu1 %v309_v20  ;;  %674 = vmatpush.bf16.msrb.mxu0 %v2239_v41  ;;  %v2190_v20 = vld [vmem:[#allocation14 + $0x50] sm:$0xf]  ;;  %v2163_v41 = vor.u32 %v2690_v36, %v2160_v38 }
  0x6b   :  { %v2191_v23 = vor.u32 %v2698_v21, %v2190_v20 }
  0x6e   :  { %675 = vmatpush.bf16.msrb.mxu0 %v2227_v60 }
  0x72   :  { %676 = vmatpush.bf16.msrb.mxu0 %v2215_v5 }
  0x76   :  { %677 = vmatpush.bf16.msrb.mxu0 %v2203_v14 }
  0x7a   :  { %678 = vmatpush.bf16.msrb.mxu0 %v2191_v23 }
  0xe6   :  { %v417_v24 = vpop.f32.mrf.mxu0 }
  0xe7   :  { %v430_v25 = vpop.f32.mrf.mxu1  ;;  %v418_v26 = vadd.f32 %v2839_v22, %v417_v24  ;;  %v2187_v22 = vor.u32 %v2696_v17, %v2184_v19  ;;  %v2170_v24 = vld [vmem:[#allocation14 + $0x30] sm:$0xf] }
  0xe9   :  { %v431_v28 = vadd.f32 %v430_v25, %v418_v26  ;;  %665 = vmatpush.bf16.msra.mxu3 %v2187_v22  ;;  %v2694_v25 = vld [vmem:[#allocation14 + $0x38] sm:$0xf0]  ;;  %v2693_v26 = vld [vmem:[#allocation14 + $0x34] sm:$0xf] }
  0xeb   :  { %v3445_v29 = vadd.f32 %v439_v27, %v431_v28  ;;  %v2171_v27 = vor.u32 %v2694_v25, %v2170_v24  ;;  %v2172_v28 = vld [vmem:[#allocation14 + $0x3c] sm:$0xf0] }
  0xec   :  { %v2175_v32 = vor.u32 %v2693_v26, %v2172_v28 }
  0xed   :  { %444 = vadd.xlane.f32.xlu0 %v3445_v29  ;;  %653 = vmatpush.bf16.msra.mxu2 %v2171_v27 }
  0xee   :  { %v419_v30 = vpop.f32.mrf.mxu0  ;;  %666 = vmatpush.bf16.msra.mxu3 %v2175_v32 }
  0xef   :  { %v432_v31 = vpop.f32.mrf.mxu1  ;;  %v2178_v30 = vld [vmem:[#allocation14 + $0x38] sm:$0xf] }
  0xf0   :  { %v2695_v31 = vld [vmem:[#allocation14 + $0x40] sm:$0xf0] }
  0xf1   :  { %v2179_v33 = vor.u32 %v2695_v31, %v2178_v30  ;;  %654 = vmatpush.bf16.msra.mxu2 %v2159_v37  ;;  %v3468_v30 = vld [vmem:[#allocation10] sm:$0xff] }
  0xf2   :  { %667 = vmatpush.bf16.msra.mxu3 %v2163_v41 }
  0xf3   :  { %679 = vmatpush.bf16.msrb.mxu0 %v2179_v33 }
  0xf5   :  { %655 = vmatpush.bf16.msra.mxu2 %v2147_v46 }
  0xf7   :  { %680 = vmatpush.bf16.msrb.mxu0 %v2167_v42 }
 0x160   :  { %v445_v48 = vpop.xlane.xlu0 %444 }
 0x161   :  { %v453_v49 = vmul.f32 %v3448_v47, %v445_v48  ;;  %v2148_v48 = vld [vmem:[#allocation14 + $0xc] sm:$0xf0] }
 0x162   :  { %v2151_v52 = vor.u32 %v2687_v45, %v2148_v48 }
 0x163   :  { %v3452_v50 = vsub.f32 %v3445_v29, %v453_v49  ;;  %v2154_v49 = vld [vmem:[#allocation14 + $0x8] sm:$0xf] }
 0x164   :  { %668 = vmatpush.bf16.msra.mxu3 %v2151_v52 }
 0x165   :  { %v455_v51 = vmul.f32 %v3452_v50, %v3452_v50 }
 0x167   :  { %456 = vadd.xlane.f32.xlu0 %v455_v51  ;;  %v2689_v51 = vld [vmem:[#allocation14 + $0x10] sm:$0xf0] }
 0x168   :  { %v2155_v53 = vor.u32 %v2689_v51, %v2154_v49 }
 0x16a   :  { %681 = vmatpush.bf16.msrb.mxu0 %v2155_v53 }
 0x1da   :  { %v457_v54 = vpop.xlane.xlu0 %456 }
 0x1db   :  { %v458_v55 = vmul.f32 %v457_v54, %v3448_v47 }
 0x1dd   :  { %v459_v56 = vadd.f32 1e-06, %v458_v55 }
 0x1df   :  { %2854 = vrsqrt.f32 %v459_v56  ;;  %vm466_vm3 = vweird.f32 %v459_v56 }
 0x1e5   :  { %v2855_v57 = vpop.eup %2854 }
 0x1e6   :  { %v461_v58 = vmul.f32 %v2855_v57, %v459_v56  ;;  %vm467_vm2 = vweird.f32 %v2855_v57 }
 0x1e7   :  { %vm468_vm4 = vmor %vm466_vm3, %vm467_vm2 }
 0x1e8   :  { %v462_v59 = vmul.f32 %v2855_v57, %v461_v58 }
 0x1ea   :  { %v463_v60 = vmul.f32 0.5, %v462_v59  ;;  %v2714_v59 = vld [vmem:[#allocation16 + $0x18] sm:$0xff] }
 0x1ec   :  { %v464_v61 = vsub.f32 1.5, %v463_v60  ;;  %v2713_v60 = vld [vmem:[#allocation16 + $0x10] sm:$0xff] }
 0x1ee   :  { %v465_v62 = vmul.f32 %v2855_v57, %v464_v61  ;;  %v2712_v61 = vld [vmem:[#allocation16 + $0x8] sm:$0xff] }
 0x1f0   :  { %v469_v0 = vsel %vm468_vm4, %v2855_v57, %v465_v62  ;;  %v2711_v62 = vld [vmem:[#allocation16] sm:$0xff] }
 0x1f1   :  { %v470_v1 = vmul.f32 %v469_v0, %v3452_v50 }
 0x1f3   :  { %v474_v3 = vmul.f32 %v2840_v63, %v470_v1  ;;  %v2718_v63 = vld [vmem:[#allocation16 + $0x38] sm:$0xff]  ;;  %v2717_v1 = vld [vmem:[#allocation16 + $0x30] sm:$0xff] }
 0x1f5   :  { %v478_v4 = vadd.f32 %v2841_v2, %v474_v3  ;;  %v2716_v2 = vld [vmem:[#allocation16 + $0x28] sm:$0xff] }
 0x1f7   :  { %v479_v5 = vpack.c.bf16 %v478_v4, %v478_v4 }
 0x1f9   :  { %656 = vmatmul.bf16.vlgmr.msra.gmra.mxu2 %v479_v5  ;;  %669 = vmatmul.bf16.vlgmr.msra.gmra.mxu3 %v479_v5 }
 0x1fa   :  { %682 = vmatmul.bf16.vlgmr.msrb.gmra.mxu0 %v479_v5 }
 0x277   :  { %v683_v8 = vpop.f32.mrf.mxu0 }
 0x278   :  { %v684_v9 = vadd.f32 %v683_v8, %v516_v7 }
 0x27a   :  { %v688_v12 = vpack.c.bf16 %v684_v9, %v684_v9  ;;  %v2715_v9 = vld [vmem:[#allocation16 + $0x20] sm:$0xff] }
 0x27c   :  { %v657_v13 = vpop.f32.mrf.mxu2  ;;  %v670_v14 = vpop.f32.mrf.mxu3  ;;  %v745_v50 = vsel %vm438_vm0, %v688_v12, 0  ;;  %v799_v44 = vunpack.c.l.b16 %v688_v12 }
 0x27d   :  { %v658_v15 = vadd.f32 %v657_v13, %v514_v10  ;;  %v671_v16 = vadd.f32 %v670_v14, %v515_v11  ;;  %754 = vmatpush.bf16.msrb.mxu2 %v745_v50 }
 0x27e   :  { %v800_v45 = vpack.c.b16 %v799_v44, %v799_v44  ;;  %v2728_v44 = vld [vmem:[#allocation22 + $0x44] sm:$0xf0] }
 0x27f   :  { %v687_v17 = vpack.c.bf16 %v671_v16, %v658_v15  ;;  %v685_v18 = vpop.f32.mrf.mxu0  ;;  %v2842_v16 = vld [vmem:[#allocation17] ss:$0 sm:$0xff] }
 0x281   :  { %v706_v19 = vunpack.c.h.b16 %v687_v17  ;;  %v761_v24 = vunpack.c.l.b16 %v687_v17  ;;  %854 = vmatpush.bf16.msra.mxu2 %v2718_v63  ;;  %v2288_v63 = vld [vmem:[#allocation22 + $0x10] sm:$0xf] }
 0x283   :  { %v707_v20 = vpack.c.b16 %v706_v19, %v706_v19  ;;  %v762_v25 = vpack.c.b16 %v761_v24, %v761_v24  ;;  %v2338_v24 = vld [vmem:[#allocation22 + $0x78] sm:$0xf0] }
 0x284   :  { %v659_v21 = vpop.f32.mrf.mxu2  ;;  %v672_v22 = vpop.f32.mrf.mxu3 }
 0x285   :  { %765 = vrot.lane.b32.xlu1 %v707_v20, %s3265_s19  ;;  %v713_v23 = vsel %vm708_vm5, %v707_v20, 0  ;;  %855 = vmatpush.bf16.msra.mxu2 %v2717_v1  ;;  %v2336_v20 = vld [vmem:[#allocation22 + $0x70] sm:$0xf]  ;;  %v2734_v21 = vld [vmem:[#allocation22 + $0x74] sm:$0xf0] }
 0x286   :  { %722 = vmatpush.bf16.xpose.msrb.mxu1 %v713_v23  ;;  %v2733_v22 = vld [vmem:[#allocation22 + $0x74] sm:$0xf]  ;;  %v2337_v23 = vor.u32 %v2734_v21, %v2336_v20 }
 0x287   :  { %v2721_v1 = vld [vmem:[#allocation22 + $0x14] sm:$0xf] }
 0x288   :  { %1042 = vmatpush.bf16.msra.mxu0 %v2337_v23 }
 0x289   :  { %856 = vmatpush.bf16.msra.mxu2 %v2716_v2 }
 0x28d   :  { %763 = vrot.lane.b32.xlu1 %v762_v25, %s3265_s19  ;;  %2240 = vmatmul.msk.bf16.vlgmr.msrb.gmra.mxu1 %vm708_vm5, %v687_v17  ;;  %v2341_v25 = vor.u32 %v2733_v22, %v2338_v24  ;;  %v2843_v24 = vld [vmem:[#allocation19] ss:$0 sm:$0xff] }
 0x28e   :  { %857 = vmatpush.bf16.msra.mxu2 %v2715_v9 }
 0x2f7   :  { %v766_v26 = vpop.permute.xlu1 %765 }
 0x2f8   :  { %v771_v27 = vsel %vm708_vm5, %v766_v26, 0 }
 0x2f9   :  { %780 = vmatpush.bf16.xpose.msrb.mxu3 %v771_v27 }
 0x2ff   :  { %v764_v28 = vpop.permute.xlu1 %763 }
 0x300   :  { %2242 = vmatmul.msk.bf16.vlgmr.msrb.gmra.mxu3 %vm708_vm5, %v764_v28 }
 0x301   :  { %894 = vmatpush.bf16.msra.mxu3 %v2714_v59  ;;  %v2723_v59 = vld [vmem:[#allocation22 + $0x24] sm:$0xf] }
 0x305   :  { %895 = vmatpush.bf16.msra.mxu3 %v2713_v60 }
 0x309   :  { %896 = vmatpush.bf16.msra.mxu3 %v2712_v61  ;;  %v2298_v61 = vld [vmem:[#allocation22 + $0x28] sm:$0xf0] }
 0x30a   :  { %v724_v31 = vpop.f32.mrf.mxu1 }
 0x30b   :  { %v725_v32 = vadd.f32 %v724_v31, %v3468_v30  ;;  %v2328_v31 = vld [vmem:[#allocation22 + $0x60] sm:$0xf] }
 0x30d   :  { %v729_v33 = vsel %vm728_vm6, %v725_v32, -inf  ;;  %897 = vmatpush.bf16.msra.mxu3 %v2711_v62  ;;  %v2301_v62 = vor.u32 %v2723_v59, %v2298_v61 }
 0x30e   :  { %730 = vmax.xlane.f32.xlu2 %v729_v33  ;;  %v2731_v33 = vld [vmem:[#allocation22 + $0x64] sm:$0xf] }
 0x312   :  { %v726_v34 = vpop.f32.mrf.mxu1 }
 0x381   :  { %v731_v35 = vpop.xlane.xlu2 %730 }
 0x382   :  { %v732_v36 = vsub.f32 %v725_v32, %v731_v35  ;;  %v2732_v32 = vld [vmem:[#allocation22 + $0x64] sm:$0xf0]  ;;  %v2330_v35 = vld [vmem:[#allocation22 + $0x68] sm:$0xf0] }
 0x383   :  { %v782_v37 = vpop.f32.mrf.mxu3  ;;  %v2329_v34 = vor.u32 %v2732_v32, %v2328_v31 }
 0x384   :  { %v733_v38 = vmul.f32 1.442695, %v732_v36  ;;  %v783_v39 = vadd.f32 %v782_v37, %v3468_v30  ;;  %v2333_v36 = vor.u32 %v2731_v33, %v2330_v35  ;;  %v2320_v37 = vld [vmem:[#allocation22 + $0x50] sm:$0xf]  ;;  %v2740_v33 = vld [vmem:[#allocation23 + $0x28] sm:$0xff]  ;;  %v2739_v35 = vld [vmem:[#allocation23 + $0x20] sm:$0xff] }
 0x385   :  { %1043 = vmatpush.bf16.msra.mxu0 %v2329_v34  ;;  %v2748_v34 = vld [vmem:[#allocation23 + $0x68] sm:$0xff] }
 0x386   :  { %2856 = vpow2.f32 %v733_v38  ;;  %v786_v40 = vsel %vm728_vm6, %v783_v39, -inf  ;;  %v2730_v38 = vld [vmem:[#allocation22 + $0x54] sm:$0xf0] }
 0x387   :  { %787 = vmax.xlane.f32.xlu2 %v786_v40  ;;  %v2321_v40 = vor.u32 %v2730_v38, %v2320_v37  ;;  %v2738_v37 = vld [vmem:[#allocation23 + $0x18] sm:$0xff] }
 0x388   :  { %v2746_v38 = vld [vmem:[#allocation23 + $0x58] sm:$0xff] }
 0x389   :  { %1044 = vmatpush.bf16.msra.mxu0 %v2321_v40  ;;  %v2736_v40 = vld [vmem:[#allocation23 + $0x8] sm:$0xff] }
 0x38b   :  { %v784_v41 = vpop.f32.mrf.mxu3 }
 0x38c   :  { %v2857_v42 = vpop.eup %2856  ;;  %v2322_v41 = vld [vmem:[#allocation22 + $0x58] sm:$0xf0] }
 0x38d   :  { %v735_v43 = vsel %vm728_vm6, %v2857_v42, 0.0 }
 0x38e   :  { %736 = vadd.xlane.f32.xlu0 %v735_v43  ;;  %v2312_v43 = vld [vmem:[#allocation22 + $0x40] sm:$0xf] }
 0x39f   :  { %801 = vrot.lane.b32.xlu2 %v800_v45, %s3265_s19  ;;  %v2727_v45 = vld [vmem:[#allocation22 + $0x44] sm:$0xf] }
 0x3fa   :  { %v788_v46 = vpop.xlane.xlu2 %787 }
 0x3fb   :  { %v789_v48 = vsub.f32 %v783_v39, %v788_v46  ;;  %v2729_v39 = vld [vmem:[#allocation22 + $0x54] sm:$0xf]  ;;  %v2313_v46 = vor.u32 %v2728_v44, %v2312_v43  ;;  %v2743_v43 = vld [vmem:[#allocation23 + $0x40] sm:$0xff] }
 0x3fc   :  { %v956_v44 = vld [vmem:[%s3570_s14] sm:$0x3] }
 0x3fd   :  { %v790_v49 = vmul.f32 1.442695, %v789_v48  ;;  %v2314_v48 = vld [vmem:[#allocation22 + $0x48] sm:$0xf0]  ;;  %1045 = vmatpush.bf16.msra.mxu0 %v2313_v46  ;;  %v959_v46 = vperm.slane %v956_v44, 1 }
 0x3ff   :  { %2858 = vpow2.f32 %v790_v49  ;;  %v2317_v49 = vor.u32 %v2727_v45, %v2314_v48  ;;  %v958_v45 = vperm.slane %v956_v44, 0 }
 0x401   :  { %v737_v51 = vpop.xlane.xlu0 %736 }
 0x402   :  { %2860 = vrcp.f32 %v737_v51  ;;  %v802_v52 = vpop.permute.xlu2 %801  ;;  %v2304_v51 = vld [vmem:[#allocation22 + $0x30] sm:$0xf] }
 0x403   :  { %v807_v53 = vsel %vm438_vm0, %v802_v52, 0  ;;  %v2726_v52 = vld [vmem:[#allocation22 + $0x34] sm:$0xf0] }
 0x404   :  { %816 = vmatpush.bf16.msra.mxu1 %v807_v53  ;;  %v2725_v53 = vld [vmem:[#allocation22 + $0x34] sm:$0xf] }
 0x405   :  { %v2859_v54 = vpop.eup %2858 }
 0x406   :  { %v792_v55 = vsel %vm728_vm6, %v2859_v54, 0.0 }
 0x407   :  { %793 = vadd.xlane.f32.xlu1 %v792_v55  ;;  %v2306_v55 = vld [vmem:[#allocation22 + $0x38] sm:$0xf0] }
 0x408   :  { %v2861_v56 = vpop.eup %2860  ;;  %1055 = vmatpush.bf16.msrb.mxu1 %v2341_v25 }
 0x409   :  { %v739_v57 = vmul.f32 %v2861_v56, %v2857_v42  ;;  %v2325_v42 = vor.u32 %v2729_v39, %v2322_v41  ;;  %v2309_v56 = vor.u32 %v2725_v53, %v2306_v55  ;;  %v2737_v39 = vld [vmem:[#allocation23 + $0x10] sm:$0xff]  ;;  %v2744_v41 = vld [vmem:[#allocation23 + $0x48] sm:$0xff] }
 0x40b   :  { %v740_v58 = vpack.c.bf16 %v739_v57, %v739_v57  ;;  %v2296_v57 = vld [vmem:[#allocation22 + $0x20] sm:$0xf] }
 0x40c   :  { %1056 = vmatpush.bf16.msrb.mxu1 %v2333_v36  ;;  %v2747_v36 = vld [vmem:[#allocation23 + $0x60] sm:$0xff] }
 0x40d   :  { %2241 = vmatmul.msk.bf16.vlgmr.msrb.gmra.mxu2 %vm728_vm6, %v740_v58  ;;  %v2724_v58 = vld [vmem:[#allocation22 + $0x24] sm:$0xf0] }
 0x40e   :  { %v2297_v60 = vor.u32 %v2724_v58, %v2296_v57 }
 0x410   :  { %1057 = vmatpush.bf16.msrb.mxu1 %v2325_v42  ;;  %v2735_v42 = vld [vmem:[#allocation23] sm:$0xff] }
 0x414   :  { %1058 = vmatpush.bf16.msrb.mxu1 %v2317_v49 }
 0x418   :  { %1059 = vmatpush.bf16.msrb.mxu1 %v2309_v56 }
 0x41c   :  { %1060 = vmatpush.bf16.msrb.mxu1 %v2301_v62 }
 0x47a   :  { %v794_v0 = vpop.xlane.xlu1 %793 }
 0x47b   :  { %2862 = vrcp.f32 %v794_v0  ;;  %v2722_v0 = vld [vmem:[#allocation22 + $0x14] sm:$0xf0] }
 0x47c   :  { %v2289_v2 = vor.u32 %v2722_v0, %v2288_v63 }
 0x481   :  { %v2863_v3 = vpop.eup %2862 }
 0x482   :  { %v796_v4 = vmul.f32 %v2863_v3, %v2859_v54  ;;  %v2305_v54 = vor.u32 %v2726_v52, %v2304_v51  ;;  %v2290_v3 = vld [vmem:[#allocation22 + $0x18] sm:$0xf0] }
 0x484   :  { %v797_v5 = vpack.c.bf16 %v796_v4, %v796_v4  ;;  %1046 = vmatpush.bf16.msra.mxu0 %v2305_v54  ;;  %v2280_v4 = vld [vmem:[#allocation22] sm:$0xf] }
 0x486   :  { %2243 = vmatmul.msk.bf16.vlgmr.msra.gmra.mxu1 %vm728_vm6, %v797_v5  ;;  %v2720_v5 = vld [vmem:[#allocation22 + $0x4] sm:$0xf0] }
 0x487   :  { %v2281_v9 = vor.u32 %v2720_v5, %v2280_v4 }
 0x488   :  { %1047 = vmatpush.bf16.msra.mxu0 %v2297_v60 }
 0x48c   :  { %1048 = vmatpush.bf16.msra.mxu0 %v2289_v2 }
 0x490   :  { %v756_v6 = vpop.f32.mrf.mxu2  ;;  %1049 = vmatpush.bf16.msra.mxu0 %v2281_v9 }
 0x491   :  { %v760_v7 = vpack.c.bf16 %v756_v6, %v756_v6  ;;  %v2293_v6 = vor.u32 %v2721_v1, %v2290_v3 }
 0x493   :  { %2277 = vmatmul.msk.bf16.vlgmr.msra.gmra.mxu3 %vm708_vm5, %v760_v7  ;;  %v2719_v7 = vld [vmem:[#allocation22 + $0x4] sm:$0xf]  ;;  %1061 = vmatpush.bf16.msrb.mxu1 %v2293_v6 }
 0x498   :  { %v758_v8 = vpop.f32.mrf.mxu2 }
 0x499   :  { %v2282_v8 = vld [vmem:[#allocation22 + $0x8] sm:$0xf0] }
 0x503   :  { %v818_v10 = vpop.f32.mrf.mxu1 }
 0x504   :  { %v822_v11 = vpack.c.bf16 %v818_v10, %v818_v10  ;;  %v2285_v10 = vor.u32 %v2719_v7, %v2282_v8 }
 0x506   :  { %2260 = vmatmul.msk.bf16.vlgmr.msra.gmra.mxu2 %vm708_vm5, %v822_v11  ;;  %1062 = vmatpush.bf16.msrb.mxu1 %v2285_v10  ;;  %v2742_v11 = vld [vmem:[#allocation23 + $0x38] sm:$0xff] }
 0x507   :  { %1220 = vmatpush.bf16.msrb.mxu2 %v2742_v11  ;;  %v2845_v11 = vld [vmem:[%s3572_s16] ss:$0 sm:$0xff] }
 0x50b   :  { %v820_v12 = vpop.f32.mrf.mxu1 }
 0x50c   :  { %v2750_v12 = vld [vmem:[#allocation23 + $0x78] sm:$0xff] }
 0x50d   :  { %1233 = vmatpush.bf16.msrb.mxu3 %v2750_v12 }
 0x516   :  { %v899_v13 = vpop.f32.mrf.mxu3 }
 0x51e   :  { %v901_v14 = vpop.f32.mrf.mxu3 }
 0x589   :  { %v859_v50 = vpop.f32.mrf.mxu2 }
 0x58a   :  { %v900_v15 = vadd.f32 %v899_v13, %v859_v50  ;;  %v2741_v50 = vld [vmem:[#allocation23 + $0x30] sm:$0xff] }
 0x58b   :  { %1221 = vmatpush.bf16.msrb.mxu2 %v2741_v50 }
 0x58c   :  { %v903_v17 = vadd.f32 %v900_v15, %v3445_v29  ;;  %v2749_v15 = vld [vmem:[#allocation23 + $0x70] sm:$0xff] }
 0x58d   :  { %1234 = vmatpush.bf16.msrb.mxu3 %v2749_v15 }
 0x58e   :  { %v3483_v18 = vadd.f32 %v2842_v16, %v903_v17 }
 0x58f   :  { %1222 = vmatpush.bf16.msrb.mxu2 %v2740_v33  ;;  %v2481_v33 = vld [vmem:[#allocation14 + $0x150] sm:$0xf] }
 0x590   :  { %911 = vadd.xlane.f32.xlu0 %v3483_v18 }
 0x591   :  { %v861_v19 = vpop.f32.mrf.mxu2  ;;  %1235 = vmatpush.bf16.msrb.mxu3 %v2748_v34  ;;  %v2770_v34 = vld [vmem:[#allocation14 + $0x158] sm:$0xf0] }
 0x593   :  { %1223 = vmatpush.bf16.msrb.mxu2 %v2739_v35  ;;  %v2769_v35 = vld [vmem:[#allocation14 + $0x154] sm:$0xf] }
 0x595   :  { %1236 = vmatpush.bf16.msrb.mxu3 %v2747_v36  ;;  %v2482_v36 = vor.u32 %v2770_v34, %v2481_v33  ;;  %v2753_v33 = vld [vmem:[#allocation14 + $0xd0] sm:$0xf0] }
 0x597   :  { %1224 = vmatpush.bf16.msrb.mxu2 %v2738_v37  ;;  %v2483_v37 = vld [vmem:[#allocation14 + $0x15c] sm:$0xf0] }
 0x599   :  { %1237 = vmatpush.bf16.msrb.mxu3 %v2746_v38  ;;  %v2489_v38 = vld [vmem:[#allocation14 + $0x158] sm:$0xf] }
 0x59b   :  { %1225 = vmatpush.bf16.msrb.mxu2 %v2737_v39  ;;  %v2771_v39 = vld [vmem:[#allocation14 + $0x160] sm:$0xf0] }
 0x59f   :  { %1226 = vmatpush.bf16.msrb.mxu2 %v2736_v40  ;;  %v2490_v40 = vor.u32 %v2771_v39, %v2489_v38 }
 0x5a3   :  { %1227 = vmatpush.bf16.msrb.mxu2 %v2735_v42  ;;  %v2767_v42 = vld [vmem:[#allocation14 + $0x140] sm:$0xf0] }
 0x603   :  { %v912_v26 = vpop.xlane.xlu0 %911 }
 0x604   :  { %v913_v27 = vmul.f32 %v912_v26, %v3448_v47 }
 0x606   :  { %v3488_v28 = vsub.f32 %v3483_v18, %v913_v27  ;;  %v2844_v27 = vld [vmem:[#allocation20] ss:$0 sm:$0xff] }
 0x608   :  { %v915_v29 = vmul.f32 %v3488_v28, %v3488_v28 }
 0x60a   :  { %916 = vadd.xlane.f32.xlu0 %v915_v29 }
 0x67d   :  { %v917_v13 = vpop.xlane.xlu0 %916 }
 0x67e   :  { %v918_v14 = vmul.f32 %v917_v13, %v3448_v47 }
 0x680   :  { %v919_v16 = vadd.f32 1e-06, %v918_v14 }
 0x682   :  { %2864 = vrsqrt.f32 %v919_v16  ;;  %vm926_vm8 = vweird.f32 %v919_v16 }
 0x688   :  { %v2865_v17 = vpop.eup %2864 }
 0x689   :  { %v921_v19 = vmul.f32 %v2865_v17, %v919_v16  ;;  %vm927_vm7 = vweird.f32 %v2865_v17 }
 0x68a   :  { %vm928_vm9 = vmor %vm926_vm8, %vm927_vm7 }
 0x68b   :  { %v922_v20 = vmul.f32 %v2865_v17, %v921_v19  ;;  %v2493_v19 = vld [vmem:[#allocation14 + $0x168] sm:$0xf] }
 0x68d   :  { %v923_v21 = vmul.f32 0.5, %v922_v20  ;;  %v2773_v20 = vld [vmem:[#allocation14 + $0x170] sm:$0xf0] }
 0x68f   :  { %v924_v22 = vsub.f32 1.5, %v923_v21  ;;  %v2772_v21 = vld [vmem:[#allocation14 + $0x16c] sm:$0xf] }
 0x691   :  { %v925_v23 = vmul.f32 %v2865_v17, %v924_v22  ;;  %v2494_v22 = vor.u32 %v2773_v20, %v2493_v19  ;;  %v2423_v20 = vld [vmem:[#allocation14 + $0xe4] sm:$0xf0] }
 0x693   :  { %v929_v25 = vsel %vm928_vm9, %v2865_v17, %v925_v23  ;;  %v2495_v23 = vld [vmem:[#allocation14 + $0x174] sm:$0xf0]  ;;  %1450 = vmatpush.bf16.msrb.mxu0 %v2494_v22  ;;  %v2756_v22 = vld [vmem:[#allocation14 + $0xe8] sm:$0xf0] }
 0x694   :  { %v930_v26 = vmul.f32 %v929_v25, %v3488_v28  ;;  %v2745_v28 = vld [vmem:[#allocation23 + $0x50] sm:$0xff] }
 0x695   :  { %1238 = vmatpush.bf16.msrb.mxu3 %v2745_v28  ;;  %v2774_v25 = vld [vmem:[#allocation14 + $0x178] sm:$0xf0]  ;;  %v2486_v28 = vor.u32 %v2769_v35, %v2483_v37 }
 0x696   :  { %v934_v29 = vmul.f32 %v2843_v24, %v930_v26  ;;  %v2501_v24 = vld [vmem:[#allocation14 + $0x170] sm:$0xf]  ;;  %v2498_v26 = vor.u32 %v2772_v21, %v2495_v23  ;;  %v2429_v21 = vld [vmem:[#allocation14 + $0xe0] sm:$0xf] }
 0x697   :  { %1451 = vmatpush.bf16.msrb.mxu0 %v2482_v36 }
 0x698   :  { %v938_v31 = vadd.f32 %v2844_v27, %v934_v29  ;;  %v2502_v27 = vor.u32 %v2774_v25, %v2501_v24  ;;  %1463 = vmatpush.bf16.msra.mxu1 %v2498_v26  ;;  %v2430_v24 = vor.u32 %v2756_v22, %v2429_v21  ;;  %v2409_v25 = vld [vmem:[#allocation14 + $0xc0] sm:$0xf]  ;;  %v2752_v26 = vld [vmem:[#allocation14 + $0xc8] sm:$0xf0] }
 0x699   :  { %1239 = vmatpush.bf16.msrb.mxu3 %v2744_v41  ;;  %v2469_v41 = vld [vmem:[#allocation14 + $0x138] sm:$0xf] }
 0x69a   :  { %v939_v32 = vpack.c.bf16 %v938_v31, %v938_v31  ;;  %1476 = vmatpush.bf16.msra.mxu2 %v2502_v27  ;;  %v2470_v44 = vor.u32 %v2767_v42, %v2469_v41  ;;  %v2751_v27 = vld [vmem:[#allocation14 + $0xc4] sm:$0xf] }
 0x69c   :  { %1050 = vmatmul.bf16.vlgmr.msra.gmra.mxu0 %v939_v32  ;;  %1063 = vmatmul.bf16.vlgmr.msrb.gmra.mxu1 %v939_v32 }
 0x69d   :  { %1240 = vmatpush.bf16.msrb.mxu3 %v2743_v43  ;;  %1464 = vmatpush.bf16.msra.mxu1 %v2486_v28  ;;  %v2766_v43 = vld [vmem:[#allocation14 + $0x13c] sm:$0xf] }
 0x69e   :  { %1477 = vmatpush.bf16.msra.mxu2 %v2490_v40  ;;  %1452 = vmatpush.bf16.msrb.mxu0 %v2470_v44  ;;  %v2846_v44 = vld [vmem:[#allocation11 + $0x1] ss:$0 sm:$0xff] }
 0x719   :  { %v1051_v48 = vpop.f32.mrf.mxu0  ;;  %v1064_v49 = vpop.f32.mrf.mxu1 }
 0x71a   :  { %v1052_v51 = vadd.f32 %v1051_v48, %v958_v45  ;;  %v1065_v52 = vadd.f32 %v1064_v49, %v959_v46  ;;  %v2471_v45 = vld [vmem:[#allocation14 + $0x144] sm:$0xf0]  ;;  %v2477_v46 = vld [vmem:[#allocation14 + $0x140] sm:$0xf]  ;;  %v2768_v48 = vld [vmem:[#allocation14 + $0x148] sm:$0xf0] }
 0x71b   :  { %v2474_v49 = vor.u32 %v2766_v43, %v2471_v45 }
 0x71c   :  { %v1070_v53 = vmul.f32 0.044715, %v1052_v51  ;;  %v1071_v54 = vmul.f32 0.044715, %v1065_v52  ;;  %v1068_v3 = vmul.f32 0.5, %v1052_v51  ;;  %v1069_v5 = vmul.f32 0.5, %v1065_v52 }
 0x71d   :  { %1465 = vmatpush.bf16.msra.mxu1 %v2474_v49 }
 0x71e   :  { %v1072_v55 = vmul.f32 %v1070_v53, %v1052_v51  ;;  %v1073_v56 = vmul.f32 %v1071_v54, %v1065_v52  ;;  %v2764_v53 = vld [vmem:[#allocation14 + $0x128] sm:$0xf0]  ;;  %v2763_v54 = vld [vmem:[#allocation14 + $0x124] sm:$0xf] }
 0x720   :  { %v1074_v57 = vmul.f32 %v1072_v55, %v1052_v51  ;;  %v1075_v58 = vmul.f32 %v1073_v56, %v1065_v52  ;;  %v2459_v56 = vld [vmem:[#allocation14 + $0x12c] sm:$0xf0] }
 0x721   :  { %v1053_v59 = vpop.f32.mrf.mxu0  ;;  %v1066_v60 = vpop.f32.mrf.mxu1 }
 0x722   :  { %v1076_v61 = vadd.f32 %v1074_v57, %v1052_v51  ;;  %v1077_v62 = vadd.f32 %v1075_v58, %v1065_v52  ;;  %v2478_v51 = vor.u32 %v2768_v48, %v2477_v46  ;;  %v2457_v52 = vld [vmem:[#allocation14 + $0x120] sm:$0xf]  ;;  %v2465_v57 = vld [vmem:[#allocation14 + $0x128] sm:$0xf]  ;;  %v2765_v58 = vld [vmem:[#allocation14 + $0x130] sm:$0xf0]  ;;  %v2462_v59 = vor.u32 %v2763_v54, %v2459_v56 }
 0x723   :  { %v2458_v55 = vor.u32 %v2764_v53, %v2457_v52  ;;  %v2466_v60 = vor.u32 %v2765_v58, %v2465_v57  ;;  %v2847_v48 = vld [vmem:[#allocation13 + $0x1] ss:$0 sm:$0xff]  ;;  %v2406_v53 = vld [vmem:[%s3564_s8 + $0x3] sm:$0x7] }
 0x724   :  { %v1078_v63 = vmul.f32 0.7978846, %v1076_v61  ;;  %v1079_v0 = vmul.f32 0.7978846, %v1077_v62  ;;  %1478 = vmatpush.bf16.msra.mxu2 %v2478_v51  ;;  %1466 = vmatpush.bf16.msra.mxu1 %v2462_v59  ;;  %v2445_v61 = vld [vmem:[#allocation14 + $0x108] sm:$0xf] }
 0x725   :  { %1453 = vmatpush.bf16.msrb.mxu0 %v2458_v55  ;;  %v2761_v62 = vld [vmem:[#allocation14 + $0x110] sm:$0xf0]  ;;  %v1316_v54 = vperm.slane %v2406_v53, 0  ;;  %v1317_v55 = vperm.slane %v2406_v53, 1 }
 0x726   :  { %2866 = vtanh.f32 %v1078_v63  ;;  %v2760_v63 = vld [vmem:[#allocation14 + $0x10c] sm:$0xf] }
 0x727   :  { %2868 = vtanh.f32 %v1079_v0  ;;  %v2446_v0 = vor.u32 %v2761_v62, %v2445_v61  ;;  %v1318_v61 = vperm.slane %v2406_v53, 2 }
 0x728   :  { %1479 = vmatpush.bf16.msra.mxu2 %v2466_v60 }
 0x729   :  { %1454 = vmatpush.bf16.msrb.mxu0 %v2446_v0 }
 0x72c   :  { %v2867_v1 = vpop.eup %2866 }
 0x72d   :  { %v2869_v2 = vpop.eup %2868  ;;  %v1082_v4 = vadd.f32 1.0, %v2867_v1  ;;  %v2447_v1 = vld [vmem:[#allocation14 + $0x114] sm:$0xf0] }
 0x72e   :  { %v1083_v6 = vadd.f32 1.0, %v2869_v2  ;;  %v2453_v2 = vld [vmem:[#allocation14 + $0x110] sm:$0xf] }
 0x72f   :  { %v1084_v7 = vmul.f32 %v1082_v4, %v1068_v3  ;;  %v2762_v3 = vld [vmem:[#allocation14 + $0x118] sm:$0xf0]  ;;  %v2450_v4 = vor.u32 %v2760_v63, %v2447_v1 }
 0x730   :  { %v1085_v8 = vmul.f32 %v1083_v6, %v1069_v5  ;;  %v2454_v5 = vor.u32 %v2762_v3, %v2453_v2  ;;  %v2433_v6 = vld [vmem:[#allocation14 + $0xf0] sm:$0xf] }
 0x731   :  { %v1086_v9 = vpack.c.bf16 %v1084_v7, %v1084_v7  ;;  %1467 = vmatpush.bf16.msra.mxu1 %v2450_v4  ;;  %v2758_v7 = vld [vmem:[#allocation14 + $0xf8] sm:$0xf0] }
 0x732   :  { %v1087_v10 = vpack.c.bf16 %v1085_v8, %v1085_v8  ;;  %1480 = vmatpush.bf16.msra.mxu2 %v2454_v5  ;;  %v2757_v8 = vld [vmem:[#allocation14 + $0xf4] sm:$0xf] }
 0x733   :  { %1228 = vmatmul.bf16.vlgmr.msrb.gmra.mxu2 %v1086_v9  ;;  %v2434_v9 = vor.u32 %v2758_v7, %v2433_v6 }
 0x734   :  { %1241 = vmatmul.bf16.vlgmr.msrb.gmra.mxu3 %v1087_v10  ;;  %v2435_v10 = vld [vmem:[#allocation14 + $0xfc] sm:$0xf0] }
 0x735   :  { %1455 = vmatpush.bf16.msrb.mxu0 %v2434_v9 }
 0x7b6   :  { %v1229_v12 = vpop.f32.mrf.mxu2 }
 0x7b7   :  { %v1230_v13 = vadd.f32 %v2845_v11, %v1229_v12  ;;  %v1242_v14 = vpop.f32.mrf.mxu3  ;;  %v2441_v11 = vld [vmem:[#allocation14 + $0xf8] sm:$0xf]  ;;  %v2759_v12 = vld [vmem:[#allocation14 + $0x100] sm:$0xf0] }
 0x7b9   :  { %v1243_v50 = vadd.f32 %v1242_v14, %v1230_v13  ;;  %v2438_v13 = vor.u32 %v2757_v8, %v2435_v10  ;;  %v2442_v14 = vor.u32 %v2759_v12, %v2441_v11 }
 0x7bb   :  { %v3501_v15 = vadd.f32 %v1243_v50, %v3483_v18  ;;  %1468 = vmatpush.bf16.msra.mxu1 %v2438_v13  ;;  %1481 = vmatpush.bf16.msra.mxu2 %v2442_v14  ;;  %v2421_v50 = vld [vmem:[#allocation14 + $0xd8] sm:$0xf] }
 0x7bd   :  { %1251 = vadd.xlane.f32.xlu0 %v3501_v15 }
 0x7be   :  { %v1231_v16 = vpop.f32.mrf.mxu2 }
 0x7bf   :  { %v1244_v17 = vpop.f32.mrf.mxu3  ;;  %v2755_v16 = vld [vmem:[#allocation14 + $0xe0] sm:$0xf0]  ;;  %1482 = vmatpush.bf16.msra.mxu2 %v2430_v24 }
 0x7c0   :  { %v2754_v17 = vld [vmem:[#allocation14 + $0xdc] sm:$0xf]  ;;  %v2422_v19 = vor.u32 %v2755_v16, %v2421_v50 }
 0x7c1   :  { %v2426_v23 = vor.u32 %v2754_v17, %v2423_v20 }
 0x7c2   :  { %1456 = vmatpush.bf16.msrb.mxu0 %v2422_v19 }
 0x7c3   :  { %1469 = vmatpush.bf16.msra.mxu1 %v2426_v23 }
 0x830   :  { %v1252_v29 = vpop.xlane.xlu0 %1251 }
 0x831   :  { %v1253_v18 = vmul.f32 %v1252_v29, %v3448_v47  ;;  %v2410_v29 = vor.u32 %v2752_v26, %v2409_v25 }
 0x833   :  { %v3506_v31 = vsub.f32 %v3501_v15, %v1253_v18  ;;  %v2411_v18 = vld [vmem:[#allocation14 + $0xcc] sm:$0xf0]  ;;  %1457 = vmatpush.bf16.msrb.mxu0 %v2410_v29 }
 0x834   :  { %v2414_v34 = vor.u32 %v2751_v27, %v2411_v18 }
 0x835   :  { %v1255_v32 = vmul.f32 %v3506_v31, %v3506_v31 }
 0x836   :  { %1470 = vmatpush.bf16.msra.mxu1 %v2414_v34 }
 0x837   :  { %1256 = vadd.xlane.f32.xlu2 %v1255_v32  ;;  %v2417_v32 = vld [vmem:[#allocation14 + $0xc8] sm:$0xf] }
 0x838   :  { %v2418_v35 = vor.u32 %v2753_v33, %v2417_v32 }
 0x83a   :  { %1483 = vmatpush.bf16.msra.mxu2 %v2418_v35 }
 0x8aa   :  { %v1257_v36 = vpop.xlane.xlu2 %1256 }
 0x8ab   :  { %v1258_v37 = vmul.f32 %v1257_v36, %v3448_v47 }
 0x8ad   :  { %v1259_v38 = vadd.f32 1e-06, %v1258_v37 }
 0x8af   :  { %2870 = vrsqrt.f32 %v1259_v38  ;;  %vm1266_vm11 = vweird.f32 %v1259_v38 }
 0x8b5   :  { %v2871_v39 = vpop.eup %2870 }
 0x8b6   :  { %v1261_v28 = vmul.f32 %v2871_v39, %v1259_v38  ;;  %vm1267_vm10 = vweird.f32 %v2871_v39  ;;  %v2778_v38 = vld [vmem:[#allocation16 + $0x58] sm:$0xff] }
 0x8b7   :  { %vm1268_vm12 = vmor %vm1266_vm11, %vm1267_vm10 }
 0x8b8   :  { %v1262_v40 = vmul.f32 %v2871_v39, %v1261_v28  ;;  %v2776_v28 = vld [vmem:[#allocation16 + $0x48] sm:$0xff] }
 0x8ba   :  { %v1263_v41 = vmul.f32 0.5, %v1262_v40 }
 0x8bc   :  { %v1264_v42 = vsub.f32 1.5, %v1263_v41  ;;  %v2775_v41 = vld [vmem:[#allocation16 + $0x40] sm:$0xff] }
 0x8be   :  { %v1265_v43 = vmul.f32 %v2871_v39, %v1264_v42 }
 0x8c0   :  { %v1269_v45 = vsel %vm1268_vm12, %v2871_v39, %v1265_v43  ;;  %v2777_v39 = vld [vmem:[#allocation16 + $0x50] sm:$0xff] }
 0x8c1   :  { %v1270_v46 = vmul.f32 %v1269_v45, %v3506_v31 }
 0x8c3   :  { %v1274_v49 = vmul.f32 %v2846_v44, %v1270_v46 }
 0x8c5   :  { %v1278_v51 = vadd.f32 %v2847_v48, %v1274_v49  ;;  %v2782_v48 = vld [vmem:[#allocation16 + $0x78] sm:$0xff]  ;;  %v2781_v49 = vld [vmem:[#allocation16 + $0x70] sm:$0xff] }
 0x8c6   :  { %1655 = vmatpush.bf16.msrb.mxu2 %v2782_v48  ;;  %v2544_v48 = vld [vmem:[#allocation22 + $0x80] sm:$0xf] }
 0x8c7   :  { %v1279_v52 = vpack.c.bf16 %v1278_v51, %v1278_v51  ;;  %v2780_v51 = vld [vmem:[#allocation16 + $0x68] sm:$0xff] }
 0x8c9   :  { %1458 = vmatmul.bf16.vlgmr.msrb.gmra.mxu0 %v1279_v52  ;;  %1471 = vmatmul.bf16.vlgmr.msra.gmra.mxu1 %v1279_v52 }
 0x8ca   :  { %1484 = vmatmul.bf16.vlgmr.msra.gmra.mxu2 %v1279_v52 }
 0x8cb   :  { %1656 = vmatpush.bf16.msrb.mxu2 %v2781_v49  ;;  %v2784_v49 = vld [vmem:[#allocation22 + $0x84] sm:$0xf0] }
 0x8cf   :  { %1657 = vmatpush.bf16.msrb.mxu2 %v2780_v51 }
 0x946   :  { %v1459_v56 = vpop.f32.mrf.mxu0  ;;  %v1472_v57 = vpop.f32.mrf.mxu1 }
 0x947   :  { %v1460_v58 = vadd.f32 %v1459_v56, %v1316_v54  ;;  %v1473_v59 = vadd.f32 %v1472_v57, %v1317_v55  ;;  %v2779_v55 = vld [vmem:[#allocation16 + $0x60] sm:$0xff] }
 0x948   :  { %1658 = vmatpush.bf16.msrb.mxu2 %v2779_v55 }
 0x949   :  { %v1489_v60 = vpack.c.bf16 %v1473_v59, %v1460_v58 }
 0x94b   :  { %v1562_v31 = vunpack.c.l.b16 %v1489_v60  ;;  %v1509_v62 = vunpack.c.h.b16 %v1489_v60 }
 0x94d   :  { %v1485_v63 = vpop.f32.mrf.mxu2  ;;  %v1563_v0 = vpack.c.b16 %v1562_v31, %v1562_v31  ;;  %v1510_v1 = vpack.c.b16 %v1509_v62, %v1509_v62  ;;  %v2848_v62 = vld [vmem:[#allocation17 + $0x1] ss:$0 sm:$0xff] }
 0x94e   :  { %v1486_v2 = vadd.f32 %v1485_v63, %v1318_v61  ;;  %v1461_v3 = vpop.f32.mrf.mxu0  ;;  %v1474_v4 = vpop.f32.mrf.mxu1 }
 0x94f   :  { %1564 = vrot.lane.b32.xlu1 %v1563_v0, %s3265_s19  ;;  %1566 = vrot.lane.b32.xlu0 %v1510_v1, %s3265_s19  ;;  %v1515_v5 = vsel %vm708_vm5, %v1510_v1, 0  ;;  %v2798_v3 = vld [vmem:[#allocation22 + $0xf4] sm:$0xf0]  ;;  %v2797_v4 = vld [vmem:[#allocation22 + $0xf4] sm:$0xf] }
 0x950   :  { %v1490_v6 = vpack.c.bf16 %v1486_v2, %v1486_v2  ;;  %1524 = vmatpush.bf16.xpose.msra.mxu3 %v1515_v5  ;;  %v2600_v2 = vld [vmem:[#allocation22 + $0xf0] sm:$0xf] }
 0x951   :  { %v2601_v5 = vor.u32 %v2798_v3, %v2600_v2 }
 0x952   :  { %v1546_v7 = vsel %vm438_vm0, %v1490_v6, 0  ;;  %v1600_v36 = vunpack.c.l.b16 %v1490_v6  ;;  %v2602_v6 = vld [vmem:[#allocation22 + $0xf8] sm:$0xf0] }
 0x954   :  { %v1601_v37 = vpack.c.b16 %v1600_v36, %v1600_v36 }
 0x955   :  { %v1487_v8 = vpop.f32.mrf.mxu2 }
 0x957   :  { %2503 = vmatmul.msk.bf16.vlgmr.msra.gmra.mxu3 %vm708_vm5, %v1489_v60 }
 0x958   :  { %1555 = vmatpush.bf16.msrb.mxu3 %v1546_v7  ;;  %v2605_v7 = vor.u32 %v2797_v4, %v2602_v6 }
 0x95c   :  { %1695 = vmatpush.bf16.msra.mxu3 %v2778_v38  ;;  %v2788_v38 = vld [vmem:[#allocation22 + $0xa4] sm:$0xf0] }
 0x960   :  { %1696 = vmatpush.bf16.msra.mxu3 %v2777_v39  ;;  %v2787_v39 = vld [vmem:[#allocation22 + $0xa4] sm:$0xf] }
 0x964   :  { %1697 = vmatpush.bf16.msra.mxu3 %v2776_v28 }
 0x968   :  { %1698 = vmatpush.bf16.msra.mxu3 %v2775_v41 }
 0x9c1   :  { %v1567_v9 = vpop.permute.xlu0 %1566  ;;  %v1565_v11 = vpop.permute.xlu1 %1564 }
 0x9c2   :  { %v1572_v10 = vsel %vm708_vm5, %v1567_v9, 0 }
 0x9c3   :  { %1581 = vmatpush.bf16.xpose.msra.mxu0 %v1572_v10 }
 0x9ca   :  { %2505 = vmatmul.msk.bf16.vlgmr.msra.gmra.mxu0 %vm708_vm5, %v1565_v11  ;;  %v2592_v11 = vld [vmem:[#allocation22 + $0xe0] sm:$0xf] }
 0x9cb   :  { %1848 = vmatpush.bf16.msrb.mxu0 %v2601_v5  ;;  %v2849_v5 = vld [vmem:[#allocation19 + $0x1] ss:$0 sm:$0xff] }
 0x9da   :  { %v1526_v12 = vpop.f32.mrf.mxu3 }
 0x9db   :  { %v1527_v13 = vadd.f32 %v1526_v12, %v3468_v30  ;;  %v2796_v12 = vld [vmem:[#allocation22 + $0xe4] sm:$0xf0] }
 0x9dd   :  { %v1530_v14 = vsel %vm728_vm6, %v1527_v13, -inf }
 0x9de   :  { %1531 = vmax.xlane.f32.xlu0 %v1530_v14  ;;  %v2593_v14 = vor.u32 %v2796_v12, %v2592_v11  ;;  %v2804_v11 = vld [vmem:[#allocation23 + $0xa8] sm:$0xff] }
 0x9df   :  { %v2812_v12 = vld [vmem:[#allocation23 + $0xe8] sm:$0xff] }
 0x9e0   :  { %1849 = vmatpush.bf16.msrb.mxu0 %v2593_v14  ;;  %v2811_v14 = vld [vmem:[#allocation23 + $0xe0] sm:$0xff] }
 0x9e2   :  { %v1528_v50 = vpop.f32.mrf.mxu3 }
 0x9e3   :  { %v2594_v50 = vld [vmem:[#allocation22 + $0xe8] sm:$0xf0] }
 0xa47   :  { %v1583_v16 = vpop.f32.mrf.mxu0 }
 0xa48   :  { %v1584_v17 = vadd.f32 %v1583_v16, %v3468_v30 }
 0xa4a   :  { %v1587_v19 = vsel %vm728_vm6, %v1584_v17, -inf }
 0xa4b   :  { %1588 = vmax.xlane.f32.xlu2 %v1587_v19  ;;  %v2794_v19 = vld [vmem:[#allocation22 + $0xd4] sm:$0xf0] }
 0xa4f   :  { %v1585_v20 = vpop.f32.mrf.mxu0 }
 0xa50   :  { %v2793_v20 = vld [vmem:[#allocation22 + $0xd4] sm:$0xf] }
 0xa51   :  { %v1532_v21 = vpop.xlane.xlu0 %1531 }
 0xa52   :  { %v1533_v22 = vsub.f32 %v1527_v13, %v1532_v21  ;;  %v2795_v13 = vld [vmem:[#allocation22 + $0xe4] sm:$0xf] }
 0xa53   :  { %v2597_v16 = vor.u32 %v2795_v13, %v2594_v50  ;;  %v2803_v13 = vld [vmem:[#allocation23 + $0xa0] sm:$0xff]  ;;  %v2802_v50 = vld [vmem:[#allocation23 + $0x98] sm:$0xff] }
 0xa54   :  { %v1534_v23 = vmul.f32 1.442695, %v1533_v22  ;;  %v2586_v22 = vld [vmem:[#allocation22 + $0xd8] sm:$0xf0] }
 0xa56   :  { %2872 = vpow2.f32 %v1534_v23  ;;  %v2589_v23 = vor.u32 %v2793_v20, %v2586_v22  ;;  %v2808_v20 = vld [vmem:[#allocation23 + $0xc8] sm:$0xff]  ;;  %v2807_v22 = vld [vmem:[#allocation23 + $0xc0] sm:$0xff] }
 0xa5c   :  { %v2873_v24 = vpop.eup %2872 }
 0xa5d   :  { %v1536_v25 = vsel %vm728_vm6, %v2873_v24, 0.0 }
 0xa5e   :  { %1537 = vadd.xlane.f32.xlu1 %v1536_v25  ;;  %v2792_v25 = vld [vmem:[#allocation22 + $0xc4] sm:$0xf0] }
 0xabe   :  { %v1589_v26 = vpop.xlane.xlu2 %1588 }
 0xabf   :  { %v1590_v27 = vsub.f32 %v1584_v17, %v1589_v26  ;;  %v2584_v17 = vld [vmem:[#allocation22 + $0xd0] sm:$0xf]  ;;  %v2791_v26 = vld [vmem:[#allocation22 + $0xc4] sm:$0xf] }
 0xac0   :  { %v2585_v21 = vor.u32 %v2794_v19, %v2584_v17  ;;  %v2801_v17 = vld [vmem:[#allocation23 + $0x90] sm:$0xff]  ;;  %v2800_v19 = vld [vmem:[#allocation23 + $0x88] sm:$0xff] }
 0xac1   :  { %v1591_v29 = vmul.f32 1.442695, %v1590_v27 }
 0xac2   :  { %1850 = vmatpush.bf16.msrb.mxu0 %v2585_v21  ;;  %v2799_v21 = vld [vmem:[#allocation23 + $0x80] sm:$0xff] }
 0xac3   :  { %2874 = vpow2.f32 %v1591_v29  ;;  %v2578_v29 = vld [vmem:[#allocation22 + $0xc8] sm:$0xf0] }
 0xac9   :  { %v2875_v18 = vpop.eup %2874 }
 0xaca   :  { %v1593_v32 = vsel %vm728_vm6, %v2875_v18, 0.0 }
 0xacb   :  { %1594 = vadd.xlane.f32.xlu2 %v1593_v32  ;;  %v2568_v32 = vld [vmem:[#allocation22 + $0xb0] sm:$0xf] }
 0xad1   :  { %v1538_v30 = vpop.xlane.xlu1 %1537 }
 0xad2   :  { %2876 = vrcp.f32 %v1538_v30  ;;  %v2790_v30 = vld [vmem:[#allocation22 + $0xb4] sm:$0xf0] }
 0xad8   :  { %v2877_v33 = vpop.eup %2876 }
 0xad9   :  { %v1540_v34 = vmul.f32 %v2877_v33, %v2873_v24  ;;  %v2576_v24 = vld [vmem:[#allocation22 + $0xc0] sm:$0xf]  ;;  %v2789_v33 = vld [vmem:[#allocation22 + $0xb4] sm:$0xf] }
 0xada   :  { %v2577_v27 = vor.u32 %v2792_v25, %v2576_v24 }
 0xadb   :  { %v1541_v35 = vpack.c.bf16 %v1540_v34, %v1540_v34  ;;  %v2569_v34 = vor.u32 %v2790_v30, %v2568_v32 }
 0xadc   :  { %1851 = vmatpush.bf16.msrb.mxu0 %v2577_v27 }
 0xadd   :  { %2504 = vmatmul.msk.bf16.vlgmr.msrb.gmra.mxu3 %vm728_vm6, %v1541_v35  ;;  %v2570_v35 = vld [vmem:[#allocation22 + $0xb8] sm:$0xf0] }
 0xade   :  { %v2573_v36 = vor.u32 %v2789_v33, %v2570_v35 }
 0xae0   :  { %1852 = vmatpush.bf16.msrb.mxu0 %v2569_v34 }
 0xae3   :  { %1602 = vrot.lane.b32.xlu2 %v1601_v37, %s3265_s19  ;;  %v2560_v37 = vld [vmem:[#allocation22 + $0xa0] sm:$0xf] }
 0xae4   :  { %v2561_v28 = vor.u32 %v2788_v38, %v2560_v37 }
 0xae6   :  { %1853 = vmatpush.bf16.msrb.mxu0 %v2561_v28 }
 0xb3e   :  { %v1595_v40 = vpop.xlane.xlu2 %1594 }
 0xb3f   :  { %2878 = vrcp.f32 %v1595_v40  ;;  %v2562_v40 = vld [vmem:[#allocation22 + $0xa8] sm:$0xf0] }
 0xb40   :  { %v2565_v41 = vor.u32 %v2787_v39, %v2562_v40 }
 0xb45   :  { %v2879_v42 = vpop.eup %2878 }
 0xb46   :  { %v1597_v43 = vmul.f32 %v2879_v42, %v2875_v18  ;;  %v1603_v44 = vpop.permute.xlu2 %1602  ;;  %v2581_v18 = vor.u32 %v2791_v26, %v2578_v29  ;;  %v2552_v42 = vld [vmem:[#allocation22 + $0x90] sm:$0xf] }
 0xb47   :  { %v1608_v45 = vsel %vm438_vm0, %v1603_v44, 0  ;;  %v2785_v44 = vld [vmem:[#allocation22 + $0x94] sm:$0xf] }
 0xb48   :  { %v1598_v46 = vpack.c.bf16 %v1597_v43, %v1597_v43  ;;  %1617 = vmatpush.bf16.msrb.mxu1 %v1608_v45  ;;  %v2786_v43 = vld [vmem:[#allocation22 + $0x94] sm:$0xf0] }
 0xb49   :  { %v2553_v45 = vor.u32 %v2786_v43, %v2552_v42 }
 0xb4b   :  { %2506 = vmatmul.msk.bf16.vlgmr.msrb.gmra.mxu1 %vm728_vm6, %v1598_v46  ;;  %v2554_v46 = vld [vmem:[#allocation22 + $0x98] sm:$0xf0]  ;;  %1854 = vmatpush.bf16.msrb.mxu0 %v2553_v45 }
 0xb4c   :  { %1861 = vmatpush.bf16.msra.mxu1 %v2605_v7  ;;  %v2557_v51 = vor.u32 %v2785_v44, %v2554_v46  ;;  %v2850_v7 = vld [vmem:[#allocation20 + $0x1] ss:$0 sm:$0xff] }
 0xb50   :  { %1862 = vmatpush.bf16.msra.mxu1 %v2597_v16  ;;  %v2810_v16 = vld [vmem:[#allocation23 + $0xd8] sm:$0xff] }
 0xb54   :  { %1863 = vmatpush.bf16.msra.mxu1 %v2589_v23  ;;  %v2541_v23 = vld [vmem:[%s3570_s14 + $0x2] sm:$0x3] }
 0xb55   :  { %v1764_v24 = vperm.slane %v2541_v23, 0  ;;  %v1765_v25 = vperm.slane %v2541_v23, 1 }
 0xb58   :  { %1864 = vmatpush.bf16.msra.mxu1 %v2581_v18 }
 0xb5c   :  { %1865 = vmatpush.bf16.msra.mxu1 %v2573_v36 }
 0xb60   :  { %v1557_v52 = vpop.f32.mrf.mxu3  ;;  %1866 = vmatpush.bf16.msra.mxu1 %v2565_v41 }
 0xb61   :  { %v1561_v53 = vpack.c.bf16 %v1557_v52, %v1557_v52  ;;  %v2783_v52 = vld [vmem:[#allocation22 + $0x84] sm:$0xf] }
 0xb63   :  { %2540 = vmatmul.msk.bf16.vlgmr.msra.gmra.mxu3 %vm708_vm5, %v1561_v53  ;;  %v2546_v53 = vld [vmem:[#allocation22 + $0x88] sm:$0xf0] }
 0xb64   :  { %1867 = vmatpush.bf16.msra.mxu1 %v2557_v51  ;;  %v2549_v55 = vor.u32 %v2783_v52, %v2546_v53 }
 0xb68   :  { %v1559_v54 = vpop.f32.mrf.mxu3  ;;  %1868 = vmatpush.bf16.msra.mxu1 %v2549_v55 }
 0xb69   :  { %v2545_v54 = vor.u32 %v2784_v49, %v2544_v48 }
 0xb6b   :  { %1855 = vmatpush.bf16.msrb.mxu0 %v2545_v54  ;;  %v2851_v54 = vld [vmem:[%s3572_s16 + $0x1] ss:$0 sm:$0xff] }
 0xbc8   :  { %v1619_v56 = vpop.f32.mrf.mxu1 }
 0xbc9   :  { %v1623_v57 = vpack.c.bf16 %v1619_v56, %v1619_v56  ;;  %v2806_v56 = vld [vmem:[#allocation23 + $0xb8] sm:$0xff] }
 0xbca   :  { %2028 = vmatpush.bf16.msra.mxu2 %v2806_v56 }
 0xbcb   :  { %2523 = vmatmul.msk.bf16.vlgmr.msrb.gmra.mxu2 %vm708_vm5, %v1623_v57  ;;  %v2814_v57 = vld [vmem:[#allocation23 + $0xf8] sm:$0xff] }
 0xbcc   :  { %2041 = vmatpush.bf16.msrb.mxu3 %v2814_v57 }
 0xbd0   :  { %v1621_v58 = vpop.f32.mrf.mxu1 }
 0xbe6   :  { %v1700_v59 = vpop.f32.mrf.mxu3 }
 0xbee   :  { %v1702_v60 = vpop.f32.mrf.mxu3 }
 0xbef   :  { %v2805_v60 = vld [vmem:[#allocation23 + $0xb0] sm:$0xff] }
 0xbf0   :  { %2029 = vmatpush.bf16.msra.mxu2 %v2805_v60 }
 0xbf4   :  { %2030 = vmatpush.bf16.msra.mxu2 %v2804_v11 }
 0xbf8   :  { %2031 = vmatpush.bf16.msra.mxu2 %v2803_v13 }
 0xbfc   :  { %2032 = vmatpush.bf16.msra.mxu2 %v2802_v50 }
 0xc00   :  { %2033 = vmatpush.bf16.msra.mxu2 %v2801_v17 }
 0xc04   :  { %2034 = vmatpush.bf16.msra.mxu2 %v2800_v19 }
 0xc08   :  { %2035 = vmatpush.bf16.msra.mxu2 %v2799_v21 }
 0xc4e   :  { %v1660_v61 = vpop.f32.mrf.mxu2 }
 0xc4f   :  { %v1701_v31 = vadd.f32 %v1700_v59, %v1660_v61  ;;  %v2813_v61 = vld [vmem:[#allocation23 + $0xf0] sm:$0xff] }
 0xc50   :  { %2042 = vmatpush.bf16.msrb.mxu3 %v2813_v61 }
 0xc51   :  { %v1704_v63 = vadd.f32 %v1701_v31, %v3501_v15 }
 0xc53   :  { %v3535_v0 = vadd.f32 %v2848_v62, %v1704_v63 }
 0xc54   :  { %2043 = vmatpush.bf16.msrb.mxu3 %v2812_v12 }
 0xc55   :  { %1715 = vadd.xlane.f32.xlu0 %v3535_v0 }
 0xc56   :  { %v1662_v1 = vpop.f32.mrf.mxu2 }
 0xc58   :  { %2044 = vmatpush.bf16.msrb.mxu3 %v2811_v14 }
 0xc5c   :  { %2045 = vmatpush.bf16.msrb.mxu3 %v2810_v16 }
 0xcc8   :  { %v1716_v8 = vpop.xlane.xlu0 %1715 }
 0xcc9   :  { %v1717_v9 = vmul.f32 %v1716_v8, %v3448_v47 }
 0xccb   :  { %v3540_v10 = vsub.f32 %v3535_v0, %v1717_v9 }
 0xccd   :  { %v1719_v15 = vmul.f32 %v3540_v10, %v3540_v10 }
 0xccf   :  { %1720 = vadd.xlane.f32.xlu0 %v1719_v15 }
 0xd42   :  { %v1721_v58 = vpop.xlane.xlu0 %1720 }
 0xd43   :  { %v1722_v59 = vmul.f32 %v1721_v58, %v3448_v47 }
 0xd45   :  { %v1723_v31 = vadd.f32 1e-06, %v1722_v59 }
 0xd47   :  { %2880 = vrsqrt.f32 %v1723_v31  ;;  %vm1730_vm14 = vweird.f32 %v1723_v31 }
 0xd4d   :  { %v2881_v62 = vpop.eup %2880 }
 0xd4e   :  { %v1725_v63 = vmul.f32 %v2881_v62, %v1723_v31  ;;  %vm1731_vm13 = vweird.f32 %v2881_v62 }
 0xd4f   :  { %vm1732_vm15 = vmor %vm1730_vm14, %vm1731_vm13 }
 0xd50   :  { %v1726_v1 = vmul.f32 %v2881_v62, %v1725_v63 }
 0xd52   :  { %v1727_v2 = vmul.f32 0.5, %v1726_v1 }
 0xd54   :  { %v1728_v3 = vsub.f32 1.5, %v1727_v2 }
 0xd56   :  { %v1729_v4 = vmul.f32 %v2881_v62, %v1728_v3 }
 0xd58   :  { %v1733_v6 = vsel %vm1732_vm15, %v2881_v62, %v1729_v4 }
 0xd59   :  { %v1734_v47 = vmul.f32 %v1733_v6, %v3540_v10  ;;  %v2809_v10 = vld [vmem:[#allocation23 + $0xd0] sm:$0xff] }
 0xd5a   :  { %2046 = vmatpush.bf16.msrb.mxu3 %v2809_v10 }
 0xd5b   :  { %v1738_v8 = vmul.f32 %v2849_v5, %v1734_v47 }
 0xd5d   :  { %v1742_v9 = vadd.f32 %v2850_v7, %v1738_v8 }
 0xd5e   :  { %2047 = vmatpush.bf16.msrb.mxu3 %v2808_v20 }
 0xd5f   :  { %v1743_v15 = vpack.c.bf16 %v1742_v9, %v1742_v9 }
 0xd61   :  { %1856 = vmatmul.bf16.vlgmr.msrb.gmra.mxu0 %v1743_v15  ;;  %1869 = vmatmul.bf16.vlgmr.msra.gmra.mxu1 %v1743_v15 }
 0xd62   :  { %2048 = vmatpush.bf16.msrb.mxu3 %v2807_v22 }
 0xdde   :  { %v1857_v26 = vpop.f32.mrf.mxu0  ;;  %v1870_v27 = vpop.f32.mrf.mxu1 }
 0xddf   :  { %v1858_v29 = vadd.f32 %v1857_v26, %v1764_v24  ;;  %v1871_v18 = vadd.f32 %v1870_v27, %v1765_v25 }
 0xde1   :  { %v1876_v32 = vmul.f32 0.044715, %v1858_v29  ;;  %v1877_v30 = vmul.f32 0.044715, %v1871_v18  ;;  %v1874_v44 = vmul.f32 0.5, %v1858_v29  ;;  %v1875_v46 = vmul.f32 0.5, %v1871_v18 }
 0xde3   :  { %v1878_v33 = vmul.f32 %v1876_v32, %v1858_v29  ;;  %v1879_v34 = vmul.f32 %v1877_v30, %v1871_v18 }
 0xde5   :  { %v1880_v35 = vmul.f32 %v1878_v33, %v1858_v29  ;;  %v1881_v36 = vmul.f32 %v1879_v34, %v1871_v18 }
 0xde6   :  { %v1859_v37 = vpop.f32.mrf.mxu0  ;;  %v1872_v38 = vpop.f32.mrf.mxu1 }
 0xde7   :  { %v1882_v39 = vadd.f32 %v1880_v35, %v1858_v29  ;;  %v1883_v28 = vadd.f32 %v1881_v36, %v1871_v18 }
 0xde9   :  { %v1884_v40 = vmul.f32 0.7978846, %v1882_v39  ;;  %v1885_v41 = vmul.f32 0.7978846, %v1883_v28 }
 0xdeb   :  { %2882 = vtanh.f32 %v1884_v40 }
 0xdec   :  { %2884 = vtanh.f32 %v1885_v41 }
 0xdf1   :  { %v2883_v42 = vpop.eup %2882 }
 0xdf2   :  { %v2885_v43 = vpop.eup %2884  ;;  %v1888_v45 = vadd.f32 1.0, %v2883_v42 }
 0xdf3   :  { %v1889_v48 = vadd.f32 1.0, %v2885_v43 }
 0xdf4   :  { %v1890_v49 = vmul.f32 %v1888_v45, %v1874_v44 }
 0xdf5   :  { %v1891_v51 = vmul.f32 %v1889_v48, %v1875_v46 }
 0xdf6   :  { %v1892_v52 = vpack.c.bf16 %v1890_v49, %v1890_v49 }
 0xdf7   :  { %v1893_v53 = vpack.c.bf16 %v1891_v51, %v1891_v51 }
 0xdf8   :  { %2036 = vmatmul.bf16.vlgmr.msra.gmra.mxu2 %v1892_v52 }
 0xdf9   :  { %2049 = vmatmul.bf16.vlgmr.msrb.gmra.mxu3 %v1893_v53 }
 0xe7b   :  { %v2037_v55 = vpop.f32.mrf.mxu2 }
 0xe7c   :  { %v2038_v56 = vadd.f32 %v2851_v54, %v2037_v55  ;;  %v2050_v57 = vpop.f32.mrf.mxu3 }
 0xe7e   :  { %v2051_v58 = vadd.f32 %v2050_v57, %v2038_v56 }
 0xe80   :  { %v2054_v59 = vadd.f32 %v2051_v58, %v3535_v0 }
 0xe82   :  { %2055 = vst [vmem:[#allocation25] sm:$0xff] %v2054_v59 }
 0xe83   :  { %v2039_v60 = vpop.f32.mrf.mxu2  ;;  %2066 = dma.vmem_to_hbm [thread:$0]  %s2062_s6, 128, %s2064_s9, [#allocation4]  }
 0xe84   :  { %v2052_v61 = vpop.f32.mrf.mxu3 }
 0xe85   :  { %3262 = dma.done.wait [#allocation4], 128  }
 0xe86   :  { %3263 = vsyncadd [#allocation4], 4294967168 }
 0xe87   :  { %2071 = vsyncpa [#allocation3], 1 }
 0xe88   :  { %2072 = vsyncpa [#allocation6], 1 }
 0xe89   :  { %2073 = vsyncpa [#allocation9], 1 }
 0xe8a   :  { %2074 = vsyncpa [#allocation12], 1 }
 0xe8b   :  { %2075 = vsyncpa [#allocation15], 1 }
 0xe8c   :  { %2076 = vsyncpa [#allocation18], 1 }
 0xe8d   :  { %2077 = vsyncpa [#allocation21], 1 }
 0xe8e   :  { %2078 = vsyncpa [#allocation24], 1 }
 0xe8f   :  { %2079 = vsyncpa [#allocation4], 1 }

</bundles_post_ra>
